<compile_context>
chip_gen: v7x
topology: tpu7x:2x2x1
jax: 0.10.0
libtpu: 0.0.40
codegen_flags: <defaults>
</compile_context>

<pallas_src>
import functools

import jax
import jax.numpy as jnp
from jax import lax
from jax.experimental import pallas as pl
from jax.experimental.pallas import tpu as pltpu


def _lstm_recurrence_kernel(gx_ref, whh_ref, out_ref, h_sc, c_sc, *, t_chunk, h_pad):
    """One grid step == T_CHUNK time steps of the LSTM recurrence.

    gx_ref:  (T_CHUNK, B_pad, 4*H_pad)  pre-computed x@W_ih^T + bias (padded gate layout)
    whh_ref: (H_pad, 4*H_pad)           padded W_hh^T (gate k in lanes [k*H_pad, (k+1)*H_pad))
    out_ref: (T_CHUNK, B_pad, H_pad)    hidden outputs for this chunk
    h_sc, c_sc: (B_pad, H_pad)          carried state (VMEM scratch, persists across grid steps)
    """
    @pl.when(pl.program_id(0) == 0)
    def _():
        # PyTorch module starts from zero h/c when init_states is None.
        h_sc[...] = jnp.zeros_like(h_sc)
        c_sc[...] = jnp.zeros_like(c_sc)

    def step(i, carry):
        # Single recurrent matmul per step: (B_pad, H_pad) x (H_pad, 4*H_pad).
        gates = gx_ref[i] + jnp.dot(
            h_sc[...].astype(whh_ref.dtype),
            whh_ref[...],
            preferred_element_type=jnp.float32,
        )  # (B_pad, 4*H_pad), gate order [i, f, g, o], each gate 128-lane aligned.

        i_t = jax.nn.sigmoid(gates[:, 0 * h_pad:1 * h_pad])
        f_t = jax.nn.sigmoid(gates[:, 1 * h_pad:2 * h_pad])
        g_t = jnp.tanh(gates[:, 2 * h_pad:3 * h_pad])
        o_t = jax.nn.sigmoid(gates[:, 3 * h_pad:4 * h_pad])

        c_new = f_t * c_sc[...] + i_t * g_t
        h_new = o_t * jnp.tanh(c_new)

        c_sc[...] = c_new
        h_sc[...] = h_new
        out_ref[i] = h_new.astype(out_ref.dtype)
        return carry

    lax.fori_loop(0, t_chunk, step, 0, unroll=True)


def _round_up(x, m):
    return -(-x // m) * m


def lstm_forward(x, weight_ih, weight_hh, bias_ih, bias_hh,
                 *, t_chunk=32, weights_dtype=jnp.float32):
    """x: (batch, seq, input) -> (batch, seq, hidden), float32.

    weight_ih: (4H, D), weight_hh: (4H, H), biases: (4H,)  (PyTorch shapes).
    """
    bs, seq, _ = x.shape
    h = weight_hh.shape[1]

    b_pad = max(8, _round_up(bs, 8))          # sublane-dense batch tile
    h_pad = max(128, _round_up(h, 128))       # lane-dense per-gate width
    t_chunk = max(1, min(t_chunk, seq))
    seq_pad = _round_up(seq, t_chunk)
    n_chunks = seq_pad // t_chunk

    x = x.astype(jnp.float32)
    w_ih = weight_ih.astype(jnp.float32)                  # (4H, D)
    w_hh = weight_hh.astype(jnp.float32)                  # (4H, H)
    bias = (bias_ih + bias_hh).astype(jnp.float32)        # (4H,)

    # ---- Phase 1 (parallel over time, plain XLA): input projection for all steps.
    gx = jnp.einsum("btd,gd->btg", x, w_ih) + bias        # (B, seq, 4H)
    gx = jnp.transpose(gx, (1, 0, 2))                     # (seq, B, 4H)
    # Lay out gates as 4 lane-aligned slots of width H_pad (zeros in the padding
    # keep padded lanes / batch rows / time steps at exactly zero state).
    gx = gx.reshape(seq, bs, 4, h)
    gx = jnp.pad(gx, ((0, seq_pad - seq), (0, b_pad - bs), (0, 0), (0, h_pad - h)))
    gx = gx.reshape(seq_pad, b_pad, 4 * h_pad)

    # Padded W_hh^T: (H_pad, 4*H_pad), gate k in columns [k*H_pad, k*H_pad + H).
    whh_t = jnp.transpose(w_hh).reshape(h, 4, h)          # (H, 4, H)
    whh_t = jnp.pad(whh_t, ((0, h_pad - h), (0, 0), (0, h_pad - h)))
    whh_t = whh_t.reshape(h_pad, 4 * h_pad).astype(weights_dtype)

    kernel = functools.partial(_lstm_recurrence_kernel, t_chunk=t_chunk, h_pad=h_pad)

    # ---- Phase 2 (sequential recurrence): Pallas kernel over time chunks.
    out = pl.pallas_call(
        kernel,
        out_shape=jax.ShapeDtypeStruct((seq_pad, b_pad, h_pad), jnp.float32),
        grid_spec=pltpu.PrefetchScalarGridSpec(
            num_scalar_prefetch=0,
            grid=(n_chunks,),
            in_specs=[
                pl.BlockSpec((t_chunk, b_pad, 4 * h_pad), lambda t: (t, 0, 0)),
                pl.BlockSpec((h_pad, 4 * h_pad), lambda t: (0, 0)),
            ],
            out_specs=pl.BlockSpec((t_chunk, b_pad, h_pad), lambda t: (t, 0, 0)),
            scratch_shapes=[
                pltpu.VMEM((b_pad, h_pad), jnp.float32),  # h_t carry
                pltpu.VMEM((b_pad, h_pad), jnp.float32),  # c_t carry
            ],
        ),
        compiler_params=pltpu.CompilerParams(
            dimension_semantics=("arbitrary",),  # time recurrence is sequential
        ),
    )(gx, whh_t)

    # Strip padding and return PyTorch layout (batch, seq, hidden).
    return jnp.transpose(out[:seq, :bs, :h], (1, 0, 2))


def _reference_lstm(x, weight_ih, weight_hh, bias_ih, bias_hh):
    """Pure-JAX reference mirroring VIBLSTM.forward (init_states=None)."""
    bs, seq, _ = x.shape
    hidden = weight_hh.shape[1]
    h_t = jnp.zeros((bs, hidden), jnp.float32)
    c_t = jnp.zeros((bs, hidden), jnp.float32)
    outs = []
    for t in range(seq):
        x_t = x[:, t, :]
        gates = x_t @ weight_ih.T + bias_ih + (h_t @ weight_hh.T + bias_hh)
        i_t = jax.nn.sigmoid(gates[:, 0 * hidden:1 * hidden])
        f_t = jax.nn.sigmoid(gates[:, 1 * hidden:2 * hidden])
        g_t = jnp.tanh(gates[:, 2 * hidden:3 * hidden])
        o_t = jax.nn.sigmoid(gates[:, 3 * hidden:4 * hidden])
        c_t = f_t * c_t + i_t * g_t
        h_t = o_t * jnp.tanh(c_t)
        outs.append(h_t[None])
    return jnp.transpose(jnp.concatenate(outs, axis=0), (1, 0, 2))


def _xavier_uniform(key, shape):
    fan_out, fan_in = shape
    bound = (6.0 / (fan_in + fan_out)) ** 0.5
    return jax.random.uniform(key, shape, jnp.float32, -bound, bound)


if __name__ == "__main__":
    # Module config: LSTM(lstminp=16, num_layers=1, hidden_dim=32)
    batch, seq, lstminp, hidden = 2, 8, 16, 32

    key = jax.random.PRNGKey(0)
    k_x, k_wih, k_whh = jax.random.split(key, 3)

    x = jax.random.normal(k_x, (batch, seq, lstminp), jnp.float32)

    # Deterministic parameter init mirroring VIBLSTM.init_weights():
    # xavier_uniform for matrices, zeros for biases.
    weight_ih = _xavier_uniform(k_wih, (4 * hidden, lstminp))
    weight_hh = _xavier_uniform(k_whh, (4 * hidden, hidden))
    bias_ih = jnp.zeros((4 * hidden,), jnp.float32)
    bias_hh = jnp.zeros((4 * hidden,), jnp.float32)

    out = lstm_forward(x, weight_ih, weight_hh, bias_ih, bias_hh)
    out = jax.block_until_ready(out)

    ref = _reference_lstm(x, weight_ih, weight_hh, bias_ih, bias_hh)
    assert out.shape == (batch, seq, hidden), out.shape
    assert jnp.allclose(out, ref, atol=1e-5, rtol=1e-5), "mismatch vs reference"

    print("KERNEL_OK")
</pallas_src>

<mosaic_0001>
module attributes {stable_mosaic.version = 11 : i64} {
  func.func @_lstm_recurrence_kernel(%arg0: i32, %arg1: memref<8x8x512xf32, #tpu.memory_space<vmem>>, %arg2: memref<128x512xf32, #tpu.memory_space<vmem>>, %arg3: memref<8x8x128xf32, #tpu.memory_space<vmem>>, %arg4: memref<8x128xf32, #tpu.memory_space<vmem>>, %arg5: memref<8x128xf32, #tpu.memory_space<vmem>>) attributes {dimension_semantics = [#tpu.dimension_semantics<arbitrary>], iteration_bounds = array<i64: 1>, scalar_prefetch = 0 : i64, scratch_operands = 2 : i64, tpu.core_type = #tpu.core_type<tc>, window_params = [{transform_indices = @transform_0, window_bounds = array<i64: 8, 8, 512>}, {pipeline_mode = #tpu.pipeline_mode<synchronous>, transform_indices = @transform_1, window_bounds = array<i64: 128, 512>}, {transform_indices = @transform_2, window_bounds = array<i64: 8, 8, 128>}]} {
    %c0_i32 = arith.constant 0 : i32
    %0 = arith.cmpi eq, %arg0, %c0_i32 : i32
    %1 = arith.extui %0 : i1 to i32
    %c0_i32_0 = arith.constant 0 : i32
    %2 = arith.cmpi ne, %1, %c0_i32_0 : i32
    scf.if %2 {
      %cst_144 = arith.constant 0.000000e+00 : f32
      %315 = vector.broadcast %cst_144 : f32 to vector<8x128xf32>
      %c0_145 = arith.constant 0 : index
      %c0_146 = arith.constant 0 : index
      %316 = vector.load %arg4[%c0_145, %c0_146] : memref<8x128xf32, #tpu.memory_space<vmem>>, vector<8x128xf32>
      tpu.vector_store %arg4[%c0_145, %c0_146], %315 {strides = array<i32>} : memref<8x128xf32, #tpu.memory_space<vmem>>, vector<8x128xf32>,
      %cst_147 = arith.constant 0.000000e+00 : f32
      %317 = vector.broadcast %cst_147 : f32 to vector<8x128xf32>
      %c0_148 = arith.constant 0 : index
      %c0_149 = arith.constant 0 : index
      %318 = vector.load %arg5[%c0_148, %c0_149] : memref<8x128xf32, #tpu.memory_space<vmem>>, vector<8x128xf32>
      tpu.vector_store %arg5[%c0_148, %c0_149], %317 {strides = array<i32>} : memref<8x128xf32, #tpu.memory_space<vmem>>, vector<8x128xf32>,
    } else {
    }
    %c0_i32_1 = arith.constant 0 : i32
    %3 = arith.index_cast %c0_i32_1 : i32 to index
    %c0 = arith.constant 0 : index
    %c0_2 = arith.constant 0 : index
    %4 = vector.load %arg1[%3, %c0, %c0_2] : memref<8x8x512xf32, #tpu.memory_space<vmem>>, vector<1x8x512xf32>
    %5 = vector.shape_cast %4 : vector<1x8x512xf32> to vector<8x512xf32>
    %c0_3 = arith.constant 0 : index
    %c0_4 = arith.constant 0 : index
    %6 = vector.load %arg4[%c0_3, %c0_4] : memref<8x128xf32, #tpu.memory_space<vmem>>, vector<8x128xf32>
    %c0_5 = arith.constant 0 : index
    %c0_6 = arith.constant 0 : index
    %7 = vector.load %arg2[%c0_5, %c0_6] : memref<128x512xf32, #tpu.memory_space<vmem>>, vector<128x512xf32>
    %cst = arith.constant dense<0.000000e+00> : vector<8x512xf32>
    %8 = tpu.matmul %6, %7, %cst {dimension_numbers = #tpu.dot_dimension_numbers<[1], [0], [0], [1], [0, 0, 1, 1], [], []>} : vector<8x128xf32>, vector<128x512xf32>, vector<8x512xf32> -> vector<8x512xf32>
    %9 = arith.addf %5, %8 : vector<8x512xf32>
    %10 = vector.extract_strided_slice %9 {offsets = [0, 0], sizes = [8, 128], strides = [1, 1]} : vector<8x512xf32> to vector<8x128xf32>
    %11 = arith.negf %10 : vector<8x128xf32>
    %12 = math.exp %11 : vector<8x128xf32>
    %cst_7 = arith.constant 1.000000e+00 : f32
    %13 = vector.broadcast %cst_7 : f32 to vector<8x128xf32>
    %14 = arith.addf %13, %12 : vector<8x128xf32>
    %15 = arith.divf %13, %14 : vector<8x128xf32>
    %16 = vector.extract_strided_slice %9 {offsets = [0, 128], sizes = [8, 128], strides = [1, 1]} : vector<8x512xf32> to vector<8x128xf32>
    %17 = arith.negf %16 : vector<8x128xf32>
    %18 = math.exp %17 : vector<8x128xf32>
    %cst_8 = arith.constant 1.000000e+00 : f32
    %19 = vector.broadcast %cst_8 : f32 to vector<8x128xf32>
    %20 = arith.addf %19, %18 : vector<8x128xf32>
    %21 = arith.divf %19, %20 : vector<8x128xf32>
    %22 = vector.extract_strided_slice %9 {offsets = [0, 256], sizes = [8, 128], strides = [1, 1]} : vector<8x512xf32> to vector<8x128xf32>
    %23 = math.tanh %22 : vector<8x128xf32>
    %24 = vector.extract_strided_slice %9 {offsets = [0, 384], sizes = [8, 128], strides = [1, 1]} : vector<8x512xf32> to vector<8x128xf32>
    %25 = arith.negf %24 : vector<8x128xf32>
    %26 = math.exp %25 : vector<8x128xf32>
    %cst_9 = arith.constant 1.000000e+00 : f32
    %27 = vector.broadcast %cst_9 : f32 to vector<8x128xf32>
    %28 = arith.addf %27, %26 : vector<8x128xf32>
    %29 = arith.divf %27, %28 : vector<8x128xf32>
    %c0_10 = arith.constant 0 : index
    %c0_11 = arith.constant 0 : index
    %30 = vector.load %arg5[%c0_10, %c0_11] : memref<8x128xf32, #tpu.memory_space<vmem>>, vector<8x128xf32>
    %31 = arith.mulf %21, %30 : vector<8x128xf32>
    %32 = arith.mulf %15, %23 : vector<8x128xf32>
    %33 = arith.addf %31, %32 : vector<8x128xf32>
    %34 = math.tanh %33 : vector<8x128xf32>
    %35 = arith.mulf %29, %34 : vector<8x128xf32>
    %c0_12 = arith.constant 0 : index
    %c0_13 = arith.constant 0 : index
    %36 = vector.load %arg5[%c0_12, %c0_13] : memref<8x128xf32, #tpu.memory_space<vmem>>, vector<8x128xf32>
    tpu.vector_store %arg5[%c0_12, %c0_13], %33 {strides = array<i32>} : memref<8x128xf32, #tpu.memory_space<vmem>>, vector<8x128xf32>,
    %c0_14 = arith.constant 0 : index
    %c0_15 = arith.constant 0 : index
    %37 = vector.load %arg4[%c0_14, %c0_15] : memref<8x128xf32, #tpu.memory_space<vmem>>, vector<8x128xf32>
    tpu.vector_store %arg4[%c0_14, %c0_15], %35 {strides = array<i32>} : memref<8x128xf32, #tpu.memory_space<vmem>>, vector<8x128xf32>,
    %38 = arith.index_cast %c0_i32_1 : i32 to index
    %c0_16 = arith.constant 0 : index
    %c0_17 = arith.constant 0 : index
    %39 = vector.load %arg3[%38, %c0_16, %c0_17] : memref<8x8x128xf32, #tpu.memory_space<vmem>>, vector<1x8x128xf32>
    %40 = vector.shape_cast %39 : vector<1x8x128xf32> to vector<8x128xf32>
    %41 = vector.shape_cast %35 : vector<8x128xf32> to vector<1x8x128xf32>
    tpu.vector_store %arg3[%38, %c0_16, %c0_17], %41 {strides = array<i32>} : memref<8x8x128xf32, #tpu.memory_space<vmem>>, vector<1x8x128xf32>,
    %c1_i32 = arith.constant 1 : i32
    %42 = arith.index_cast %c1_i32 : i32 to index
    %c0_18 = arith.constant 0 : index
    %c0_19 = arith.constant 0 : index
    %43 = vector.load %arg1[%42, %c0_18, %c0_19] : memref<8x8x512xf32, #tpu.memory_space<vmem>>, vector<1x8x512xf32>
    %44 = vector.shape_cast %43 : vector<1x8x512xf32> to vector<8x512xf32>
    %c0_20 = arith.constant 0 : index
    %c0_21 = arith.constant 0 : index
    %45 = vector.load %arg4[%c0_20, %c0_21] : memref<8x128xf32, #tpu.memory_space<vmem>>, vector<8x128xf32>
    %c0_22 = arith.constant 0 : index
    %c0_23 = arith.constant 0 : index
    %46 = vector.load %arg2[%c0_22, %c0_23] : memref<128x512xf32, #tpu.memory_space<vmem>>, vector<128x512xf32>
    %cst_24 = arith.constant dense<0.000000e+00> : vector<8x512xf32>
    %47 = tpu.matmul %45, %46, %cst_24 {dimension_numbers = #tpu.dot_dimension_numbers<[1], [0], [0], [1], [0, 0, 1, 1], [], []>} : vector<8x128xf32>, vector<128x512xf32>, vector<8x512xf32> -> vector<8x512xf32>
    %48 = arith.addf %44, %47 : vector<8x512xf32>
    %49 = vector.extract_strided_slice %48 {offsets = [0, 0], sizes = [8, 128], strides = [1, 1]} : vector<8x512xf32> to vector<8x128xf32>
    %50 = arith.negf %49 : vector<8x128xf32>
    %51 = math.exp %50 : vector<8x128xf32>
    %cst_25 = arith.constant 1.000000e+00 : f32
    %52 = vector.broadcast %cst_25 : f32 to vector<8x128xf32>
    %53 = arith.addf %52, %51 : vector<8x128xf32>
    %54 = arith.divf %52, %53 : vector<8x128xf32>
    %55 = vector.extract_strided_slice %48 {offsets = [0, 128], sizes = [8, 128], strides = [1, 1]} : vector<8x512xf32> to vector<8x128xf32>
    %56 = arith.negf %55 : vector<8x128xf32>
    %57 = math.exp %56 : vector<8x128xf32>
    %cst_26 = arith.constant 1.000000e+00 : f32
    %58 = vector.broadcast %cst_26 : f32 to vector<8x128xf32>
    %59 = arith.addf %58, %57 : vector<8x128xf32>
    %60 = arith.divf %58, %59 : vector<8x128xf32>
    %61 = vector.extract_strided_slice %48 {offsets = [0, 256], sizes = [8, 128], strides = [1, 1]} : vector<8x512xf32> to vector<8x128xf32>
    %62 = math.tanh %61 : vector<8x128xf32>
    %63 = vector.extract_strided_slice %48 {offsets = [0, 384], sizes = [8, 128], strides = [1, 1]} : vector<8x512xf32> to vector<8x128xf32>
    %64 = arith.negf %63 : vector<8x128xf32>
    %65 = math.exp %64 : vector<8x128xf32>
    %cst_27 = arith.constant 1.000000e+00 : f32
    %66 = vector.broadcast %cst_27 : f32 to vector<8x128xf32>
    %67 = arith.addf %66, %65 : vector<8x128xf32>
    %68 = arith.divf %66, %67 : vector<8x128xf32>
    %c0_28 = arith.constant 0 : index
    %c0_29 = arith.constant 0 : index
    %69 = vector.load %arg5[%c0_28, %c0_29] : memref<8x128xf32, #tpu.memory_space<vmem>>, vector<8x128xf32>
    %70 = arith.mulf %60, %69 : vector<8x128xf32>
    %71 = arith.mulf %54, %62 : vector<8x128xf32>
    %72 = arith.addf %70, %71 : vector<8x128xf32>
    %73 = math.tanh %72 : vector<8x128xf32>
    %74 = arith.mulf %68, %73 : vector<8x128xf32>
    %c0_30 = arith.constant 0 : index
    %c0_31 = arith.constant 0 : index
    %75 = vector.load %arg5[%c0_30, %c0_31] : memref<8x128xf32, #tpu.memory_space<vmem>>, vector<8x128xf32>
    tpu.vector_store %arg5[%c0_30, %c0_31], %72 {strides = array<i32>} : memref<8x128xf32, #tpu.memory_space<vmem>>, vector<8x128xf32>,
    %c0_32 = arith.constant 0 : index
    %c0_33 = arith.constant 0 : index
    %76 = vector.load %arg4[%c0_32, %c0_33] : memref<8x128xf32, #tpu.memory_space<vmem>>, vector<8x128xf32>
    tpu.vector_store %arg4[%c0_32, %c0_33], %74 {strides = array<i32>} : memref<8x128xf32, #tpu.memory_space<vmem>>, vector<8x128xf32>,
    %77 = arith.index_cast %c1_i32 : i32 to index
    %c0_34 = arith.constant 0 : index
    %c0_35 = arith.constant 0 : index
    %78 = vector.load %arg3[%77, %c0_34, %c0_35] : memref<8x8x128xf32, #tpu.memory_space<vmem>>, vector<1x8x128xf32>
    %79 = vector.shape_cast %78 : vector<1x8x128xf32> to vector<8x128xf32>
    %80 = vector.shape_cast %74 : vector<8x128xf32> to vector<1x8x128xf32>
    tpu.vector_store %arg3[%77, %c0_34, %c0_35], %80 {strides = array<i32>} : memref<8x8x128xf32, #tpu.memory_space<vmem>>, vector<1x8x128xf32>,
    %c2_i32 = arith.constant 2 : i32
    %81 = arith.index_cast %c2_i32 : i32 to index
    %c0_36 = arith.constant 0 : index
    %c0_37 = arith.constant 0 : index
    %82 = vector.load %arg1[%81, %c0_36, %c0_37] : memref<8x8x512xf32, #tpu.memory_space<vmem>>, vector<1x8x512xf32>
    %83 = vector.shape_cast %82 : vector<1x8x512xf32> to vector<8x512xf32>
    %c0_38 = arith.constant 0 : index
    %c0_39 = arith.constant 0 : index
    %84 = vector.load %arg4[%c0_38, %c0_39] : memref<8x128xf32, #tpu.memory_space<vmem>>, vector<8x128xf32>
    %c0_40 = arith.constant 0 : index
    %c0_41 = arith.constant 0 : index
    %85 = vector.load %arg2[%c0_40, %c0_41] : memref<128x512xf32, #tpu.memory_space<vmem>>, vector<128x512xf32>
    %cst_42 = arith.constant dense<0.000000e+00> : vector<8x512xf32>
    %86 = tpu.matmul %84, %85, %cst_42 {dimension_numbers = #tpu.dot_dimension_numbers<[1], [0], [0], [1], [0, 0, 1, 1], [], []>} : vector<8x128xf32>, vector<128x512xf32>, vector<8x512xf32> -> vector<8x512xf32>
    %87 = arith.addf %83, %86 : vector<8x512xf32>
    %88 = vector.extract_strided_slice %87 {offsets = [0, 0], sizes = [8, 128], strides = [1, 1]} : vector<8x512xf32> to vector<8x128xf32>
    %89 = arith.negf %88 : vector<8x128xf32>
    %90 = math.exp %89 : vector<8x128xf32>
    %cst_43 = arith.constant 1.000000e+00 : f32
    %91 = vector.broadcast %cst_43 : f32 to vector<8x128xf32>
    %92 = arith.addf %91, %90 : vector<8x128xf32>
    %93 = arith.divf %91, %92 : vector<8x128xf32>
    %94 = vector.extract_strided_slice %87 {offsets = [0, 128], sizes = [8, 128], strides = [1, 1]} : vector<8x512xf32> to vector<8x128xf32>
    %95 = arith.negf %94 : vector<8x128xf32>
    %96 = math.exp %95 : vector<8x128xf32>
    %cst_44 = arith.constant 1.000000e+00 : f32
    %97 = vector.broadcast %cst_44 : f32 to vector<8x128xf32>
    %98 = arith.addf %97, %96 : vector<8x128xf32>
    %99 = arith.divf %97, %98 : vector<8x128xf32>
    %100 = vector.extract_strided_slice %87 {offsets = [0, 256], sizes = [8, 128], strides = [1, 1]} : vector<8x512xf32> to vector<8x128xf32>
    %101 = math.tanh %100 : vector<8x128xf32>
    %102 = vector.extract_strided_slice %87 {offsets = [0, 384], sizes = [8, 128], strides = [1, 1]} : vector<8x512xf32> to vector<8x128xf32>
    %103 = arith.negf %102 : vector<8x128xf32>
    %104 = math.exp %103 : vector<8x128xf32>
    %cst_45 = arith.constant 1.000000e+00 : f32
    %105 = vector.broadcast %cst_45 : f32 to vector<8x128xf32>
    %106 = arith.addf %105, %104 : vector<8x128xf32>
    %107 = arith.divf %105, %106 : vector<8x128xf32>
    %c0_46 = arith.constant 0 : index
    %c0_47 = arith.constant 0 : index
    %108 = vector.load %arg5[%c0_46, %c0_47] : memref<8x128xf32, #tpu.memory_space<vmem>>, vector<8x128xf32>
    %109 = arith.mulf %99, %108 : vector<8x128xf32>
    %110 = arith.mulf %93, %101 : vector<8x128xf32>
    %111 = arith.addf %109, %110 : vector<8x128xf32>
    %112 = math.tanh %111 : vector<8x128xf32>
    %113 = arith.mulf %107, %112 : vector<8x128xf32>
    %c0_48 = arith.constant 0 : index
    %c0_49 = arith.constant 0 : index
    %114 = vector.load %arg5[%c0_48, %c0_49] : memref<8x128xf32, #tpu.memory_space<vmem>>, vector<8x128xf32>
    tpu.vector_store %arg5[%c0_48, %c0_49], %111 {strides = array<i32>} : memref<8x128xf32, #tpu.memory_space<vmem>>, vector<8x128xf32>,
    %c0_50 = arith.constant 0 : index
    %c0_51 = arith.constant 0 : index
    %115 = vector.load %arg4[%c0_50, %c0_51] : memref<8x128xf32, #tpu.memory_space<vmem>>, vector<8x128xf32>
    tpu.vector_store %arg4[%c0_50, %c0_51], %113 {strides = array<i32>} : memref<8x128xf32, #tpu.memory_space<vmem>>, vector<8x128xf32>,
    %116 = arith.index_cast %c2_i32 : i32 to index
    %c0_52 = arith.constant 0 : index
    %c0_53 = arith.constant 0 : index
    %117 = vector.load %arg3[%116, %c0_52, %c0_53] : memref<8x8x128xf32, #tpu.memory_space<vmem>>, vector<1x8x128xf32>
    %118 = vector.shape_cast %117 : vector<1x8x128xf32> to vector<8x128xf32>
    %119 = vector.shape_cast %113 : vector<8x128xf32> to vector<1x8x128xf32>
    tpu.vector_store %arg3[%116, %c0_52, %c0_53], %119 {strides = array<i32>} : memref<8x8x128xf32, #tpu.memory_space<vmem>>, vector<1x8x128xf32>,
    %c3_i32 = arith.constant 3 : i32
    %120 = arith.index_cast %c3_i32 : i32 to index
    %c0_54 = arith.constant 0 : index
    %c0_55 = arith.constant 0 : index
    %121 = vector.load %arg1[%120, %c0_54, %c0_55] : memref<8x8x512xf32, #tpu.memory_space<vmem>>, vector<1x8x512xf32>
    %122 = vector.shape_cast %121 : vector<1x8x512xf32> to vector<8x512xf32>
    %c0_56 = arith.constant 0 : index
    %c0_57 = arith.constant 0 : index
    %123 = vector.load %arg4[%c0_56, %c0_57] : memref<8x128xf32, #tpu.memory_space<vmem>>, vector<8x128xf32>
    %c0_58 = arith.constant 0 : index
    %c0_59 = arith.constant 0 : index
    %124 = vector.load %arg2[%c0_58, %c0_59] : memref<128x512xf32, #tpu.memory_space<vmem>>, vector<128x512xf32>
    %cst_60 = arith.constant dense<0.000000e+00> : vector<8x512xf32>
    %125 = tpu.matmul %123, %124, %cst_60 {dimension_numbers = #tpu.dot_dimension_numbers<[1], [0], [0], [1], [0, 0, 1, 1], [], []>} : vector<8x128xf32>, vector<128x512xf32>, vector<8x512xf32> -> vector<8x512xf32>
    %126 = arith.addf %122, %125 : vector<8x512xf32>
    %127 = vector.extract_strided_slice %126 {offsets = [0, 0], sizes = [8, 128], strides = [1, 1]} : vector<8x512xf32> to vector<8x128xf32>
    %128 = arith.negf %127 : vector<8x128xf32>
    %129 = math.exp %128 : vector<8x128xf32>
    %cst_61 = arith.constant 1.000000e+00 : f32
    %130 = vector.broadcast %cst_61 : f32 to vector<8x128xf32>
    %131 = arith.addf %130, %129 : vector<8x128xf32>
    %132 = arith.divf %130, %131 : vector<8x128xf32>
    %133 = vector.extract_strided_slice %126 {offsets = [0, 128], sizes = [8, 128], strides = [1, 1]} : vector<8x512xf32> to vector<8x128xf32>
    %134 = arith.negf %133 : vector<8x128xf32>
    %135 = math.exp %134 : vector<8x128xf32>
    %cst_62 = arith.constant 1.000000e+00 : f32
    %136 = vector.broadcast %cst_62 : f32 to vector<8x128xf32>
    %137 = arith.addf %136, %135 : vector<8x128xf32>
    %138 = arith.divf %136, %137 : vector<8x128xf32>
    %139 = vector.extract_strided_slice %126 {offsets = [0, 256], sizes = [8, 128], strides = [1, 1]} : vector<8x512xf32> to vector<8x128xf32>
    %140 = math.tanh %139 : vector<8x128xf32>
    %141 = vector.extract_strided_slice %126 {offsets = [0, 384], sizes = [8, 128], strides = [1, 1]} : vector<8x512xf32> to vector<8x128xf32>
    %142 = arith.negf %141 : vector<8x128xf32>
    %143 = math.exp %142 : vector<8x128xf32>
    %cst_63 = arith.constant 1.000000e+00 : f32
    %144 = vector.broadcast %cst_63 : f32 to vector<8x128xf32>
    %145 = arith.addf %144, %143 : vector<8x128xf32>
    %146 = arith.divf %144, %145 : vector<8x128xf32>
    %c0_64 = arith.constant 0 : index
    %c0_65 = arith.constant 0 : index
    %147 = vector.load %arg5[%c0_64, %c0_65] : memref<8x128xf32, #tpu.memory_space<vmem>>, vector<8x128xf32>
    %148 = arith.mulf %138, %147 : vector<8x128xf32>
    %149 = arith.mulf %132, %140 : vector<8x128xf32>
    %150 = arith.addf %148, %149 : vector<8x128xf32>
    %151 = math.tanh %150 : vector<8x128xf32>
    %152 = arith.mulf %146, %151 : vector<8x128xf32>
    %c0_66 = arith.constant 0 : index
    %c0_67 = arith.constant 0 : index
    %153 = vector.load %arg5[%c0_66, %c0_67] : memref<8x128xf32, #tpu.memory_space<vmem>>, vector<8x128xf32>
    tpu.vector_store %arg5[%c0_66, %c0_67], %150 {strides = array<i32>} : memref<8x128xf32, #tpu.memory_space<vmem>>, vector<8x128xf32>,
    %c0_68 = arith.constant 0 : index
    %c0_69 = arith.constant 0 : index
    %154 = vector.load %arg4[%c0_68, %c0_69] : memref<8x128xf32, #tpu.memory_space<vmem>>, vector<8x128xf32>
    tpu.vector_store %arg4[%c0_68, %c0_69], %152 {strides = array<i32>} : memref<8x128xf32, #tpu.memory_space<vmem>>, vector<8x128xf32>,
    %155 = arith.index_cast %c3_i32 : i32 to index
    %c0_70 = arith.constant 0 : index
    %c0_71 = arith.constant 0 : index
    %156 = vector.load %arg3[%155, %c0_70, %c0_71] : memref<8x8x128xf32, #tpu.memory_space<vmem>>, vector<1x8x128xf32>
    %157 = vector.shape_cast %156 : vector<1x8x128xf32> to vector<8x128xf32>
    %158 = vector.shape_cast %152 : vector<8x128xf32> to vector<1x8x128xf32>
    tpu.vector_store %arg3[%155, %c0_70, %c0_71], %158 {strides = array<i32>} : memref<8x8x128xf32, #tpu.memory_space<vmem>>, vector<1x8x128xf32>,
    %c4_i32 = arith.constant 4 : i32
    %159 = arith.index_cast %c4_i32 : i32 to index
    %c0_72 = arith.constant 0 : index
    %c0_73 = arith.constant 0 : index
    %160 = vector.load %arg1[%159, %c0_72, %c0_73] : memref<8x8x512xf32, #tpu.memory_space<vmem>>, vector<1x8x512xf32>
    %161 = vector.shape_cast %160 : vector<1x8x512xf32> to vector<8x512xf32>
    %c0_74 = arith.constant 0 : index
    %c0_75 = arith.constant 0 : index
    %162 = vector.load %arg4[%c0_74, %c0_75] : memref<8x128xf32, #tpu.memory_space<vmem>>, vector<8x128xf32>
    %c0_76 = arith.constant 0 : index
    %c0_77 = arith.constant 0 : index
    %163 = vector.load %arg2[%c0_76, %c0_77] : memref<128x512xf32, #tpu.memory_space<vmem>>, vector<128x512xf32>
    %cst_78 = arith.constant dense<0.000000e+00> : vector<8x512xf32>
    %164 = tpu.matmul %162, %163, %cst_78 {dimension_numbers = #tpu.dot_dimension_numbers<[1], [0], [0], [1], [0, 0, 1, 1], [], []>} : vector<8x128xf32>, vector<128x512xf32>, vector<8x512xf32> -> vector<8x512xf32>
    %165 = arith.addf %161, %164 : vector<8x512xf32>
    %166 = vector.extract_strided_slice %165 {offsets = [0, 0], sizes = [8, 128], strides = [1, 1]} : vector<8x512xf32> to vector<8x128xf32>
    %167 = arith.negf %166 : vector<8x128xf32>
    %168 = math.exp %167 : vector<8x128xf32>
    %cst_79 = arith.constant 1.000000e+00 : f32
    %169 = vector.broadcast %cst_79 : f32 to vector<8x128xf32>
    %170 = arith.addf %169, %168 : vector<8x128xf32>
    %171 = arith.divf %169, %170 : vector<8x128xf32>
    %172 = vector.extract_strided_slice %165 {offsets = [0, 128], sizes = [8, 128], strides = [1, 1]} : vector<8x512xf32> to vector<8x128xf32>
    %173 = arith.negf %172 : vector<8x128xf32>
    %174 = math.exp %173 : vector<8x128xf32>
    %cst_80 = arith.constant 1.000000e+00 : f32
    %175 = vector.broadcast %cst_80 : f32 to vector<8x128xf32>
    %176 = arith.addf %175, %174 : vector<8x128xf32>
    %177 = arith.divf %175, %176 : vector<8x128xf32>
    %178 = vector.extract_strided_slice %165 {offsets = [0, 256], sizes = [8, 128], strides = [1, 1]} : vector<8x512xf32> to vector<8x128xf32>
    %179 = math.tanh %178 : vector<8x128xf32>
    %180 = vector.extract_strided_slice %165 {offsets = [0, 384], sizes = [8, 128], strides = [1, 1]} : vector<8x512xf32> to vector<8x128xf32>
    %181 = arith.negf %180 : vector<8x128xf32>
    %182 = math.exp %181 : vector<8x128xf32>
    %cst_81 = arith.constant 1.000000e+00 : f32
    %183 = vector.broadcast %cst_81 : f32 to vector<8x128xf32>
    %184 = arith.addf %183, %182 : vector<8x128xf32>
    %185 = arith.divf %183, %184 : vector<8x128xf32>
    %c0_82 = arith.constant 0 : index
    %c0_83 = arith.constant 0 : index
    %186 = vector.load %arg5[%c0_82, %c0_83] : memref<8x128xf32, #tpu.memory_space<vmem>>, vector<8x128xf32>
    %187 = arith.mulf %177, %186 : vector<8x128xf32>
    %188 = arith.mulf %171, %179 : vector<8x128xf32>
    %189 = arith.addf %187, %188 : vector<8x128xf32>
    %190 = math.tanh %189 : vector<8x128xf32>
    %191 = arith.mulf %185, %190 : vector<8x128xf32>
    %c0_84 = arith.constant 0 : index
    %c0_85 = arith.constant 0 : index
    %192 = vector.load %arg5[%c0_84, %c0_85] : memref<8x128xf32, #tpu.memory_space<vmem>>, vector<8x128xf32>
    tpu.vector_store %arg5[%c0_84, %c0_85], %189 {strides = array<i32>} : memref<8x128xf32, #tpu.memory_space<vmem>>, vector<8x128xf32>,
    %c0_86 = arith.constant 0 : index
    %c0_87 = arith.constant 0 : index
    %193 = vector.load %arg4[%c0_86, %c0_87] : memref<8x128xf32, #tpu.memory_space<vmem>>, vector<8x128xf32>
    tpu.vector_store %arg4[%c0_86, %c0_87], %191 {strides = array<i32>} : memref<8x128xf32, #tpu.memory_space<vmem>>, vector<8x128xf32>,
    %194 = arith.index_cast %c4_i32 : i32 to index
    %c0_88 = arith.constant 0 : index
    %c0_89 = arith.constant 0 : index
    %195 = vector.load %arg3[%194, %c0_88, %c0_89] : memref<8x8x128xf32, #tpu.memory_space<vmem>>, vector<1x8x128xf32>
    %196 = vector.shape_cast %195 : vector<1x8x128xf32> to vector<8x128xf32>
    %197 = vector.shape_cast %191 : vector<8x128xf32> to vector<1x8x128xf32>
    tpu.vector_store %arg3[%194, %c0_88, %c0_89], %197 {strides = array<i32>} : memref<8x8x128xf32, #tpu.memory_space<vmem>>, vector<1x8x128xf32>,
    %c5_i32 = arith.constant 5 : i32
    %198 = arith.index_cast %c5_i32 : i32 to index
    %c0_90 = arith.constant 0 : index
    %c0_91 = arith.constant 0 : index
    %199 = vector.load %arg1[%198, %c0_90, %c0_91] : memref<8x8x512xf32, #tpu.memory_space<vmem>>, vector<1x8x512xf32>
    %200 = vector.shape_cast %199 : vector<1x8x512xf32> to vector<8x512xf32>
    %c0_92 = arith.constant 0 : index
    %c0_93 = arith.constant 0 : index
    %201 = vector.load %arg4[%c0_92, %c0_93] : memref<8x128xf32, #tpu.memory_space<vmem>>, vector<8x128xf32>
    %c0_94 = arith.constant 0 : index
    %c0_95 = arith.constant 0 : index
    %202 = vector.load %arg2[%c0_94, %c0_95] : memref<128x512xf32, #tpu.memory_space<vmem>>, vector<128x512xf32>
    %cst_96 = arith.constant dense<0.000000e+00> : vector<8x512xf32>
    %203 = tpu.matmul %201, %202, %cst_96 {dimension_numbers = #tpu.dot_dimension_numbers<[1], [0], [0], [1], [0, 0, 1, 1], [], []>} : vector<8x128xf32>, vector<128x512xf32>, vector<8x512xf32> -> vector<8x512xf32>
    %204 = arith.addf %200, %203 : vector<8x512xf32>
    %205 = vector.extract_strided_slice %204 {offsets = [0, 0], sizes = [8, 128], strides = [1, 1]} : vector<8x512xf32> to vector<8x128xf32>
    %206 = arith.negf %205 : vector<8x128xf32>
    %207 = math.exp %206 : vector<8x128xf32>
    %cst_97 = arith.constant 1.000000e+00 : f32
    %208 = vector.broadcast %cst_97 : f32 to vector<8x128xf32>
    %209 = arith.addf %208, %207 : vector<8x128xf32>
    %210 = arith.divf %208, %209 : vector<8x128xf32>
    %211 = vector.extract_strided_slice %204 {offsets = [0, 128], sizes = [8, 128], strides = [1, 1]} : vector<8x512xf32> to vector<8x128xf32>
    %212 = arith.negf %211 : vector<8x128xf32>
    %213 = math.exp %212 : vector<8x128xf32>
    %cst_98 = arith.constant 1.000000e+00 : f32
    %214 = vector.broadcast %cst_98 : f32 to vector<8x128xf32>
    %215 = arith.addf %214, %213 : vector<8x128xf32>
    %216 = arith.divf %214, %215 : vector<8x128xf32>
    %217 = vector.extract_strided_slice %204 {offsets = [0, 256], sizes = [8, 128], strides = [1, 1]} : vector<8x512xf32> to vector<8x128xf32>
    %218 = math.tanh %217 : vector<8x128xf32>
    %219 = vector.extract_strided_slice %204 {offsets = [0, 384], sizes = [8, 128], strides = [1, 1]} : vector<8x512xf32> to vector<8x128xf32>
    %220 = arith.negf %219 : vector<8x128xf32>
    %221 = math.exp %220 : vector<8x128xf32>
    %cst_99 = arith.constant 1.000000e+00 : f32
    %222 = vector.broadcast %cst_99 : f32 to vector<8x128xf32>
    %223 = arith.addf %222, %221 : vector<8x128xf32>
    %224 = arith.divf %222, %223 : vector<8x128xf32>
    %c0_100 = arith.constant 0 : index
    %c0_101 = arith.constant 0 : index
    %225 = vector.load %arg5[%c0_100, %c0_101] : memref<8x128xf32, #tpu.memory_space<vmem>>, vector<8x128xf32>
    %226 = arith.mulf %216, %225 : vector<8x128xf32>
    %227 = arith.mulf %210, %218 : vector<8x128xf32>
    %228 = arith.addf %226, %227 : vector<8x128xf32>
    %229 = math.tanh %228 : vector<8x128xf32>
    %230 = arith.mulf %224, %229 : vector<8x128xf32>
    %c0_102 = arith.constant 0 : index
    %c0_103 = arith.constant 0 : index
    %231 = vector.load %arg5[%c0_102, %c0_103] : memref<8x128xf32, #tpu.memory_space<vmem>>, vector<8x128xf32>
    tpu.vector_store %arg5[%c0_102, %c0_103], %228 {strides = array<i32>} : memref<8x128xf32, #tpu.memory_space<vmem>>, vector<8x128xf32>,
    %c0_104 = arith.constant 0 : index
    %c0_105 = arith.constant 0 : index
    %232 = vector.load %arg4[%c0_104, %c0_105] : memref<8x128xf32, #tpu.memory_space<vmem>>, vector<8x128xf32>
    tpu.vector_store %arg4[%c0_104, %c0_105], %230 {strides = array<i32>} : memref<8x128xf32, #tpu.memory_space<vmem>>, vector<8x128xf32>,
    %233 = arith.index_cast %c5_i32 : i32 to index
    %c0_106 = arith.constant 0 : index
    %c0_107 = arith.constant 0 : index
    %234 = vector.load %arg3[%233, %c0_106, %c0_107] : memref<8x8x128xf32, #tpu.memory_space<vmem>>, vector<1x8x128xf32>
    %235 = vector.shape_cast %234 : vector<1x8x128xf32> to vector<8x128xf32>
    %236 = vector.shape_cast %230 : vector<8x128xf32> to vector<1x8x128xf32>
    tpu.vector_store %arg3[%233, %c0_106, %c0_107], %236 {strides = array<i32>} : memref<8x8x128xf32, #tpu.memory_space<vmem>>, vector<1x8x128xf32>,
    %c6_i32 = arith.constant 6 : i32
    %237 = arith.index_cast %c6_i32 : i32 to index
    %c0_108 = arith.constant 0 : index
    %c0_109 = arith.constant 0 : index
    %238 = vector.load %arg1[%237, %c0_108, %c0_109] : memref<8x8x512xf32, #tpu.memory_space<vmem>>, vector<1x8x512xf32>
    %239 = vector.shape_cast %238 : vector<1x8x512xf32> to vector<8x512xf32>
    %c0_110 = arith.constant 0 : index
    %c0_111 = arith.constant 0 : index
    %240 = vector.load %arg4[%c0_110, %c0_111] : memref<8x128xf32, #tpu.memory_space<vmem>>, vector<8x128xf32>
    %c0_112 = arith.constant 0 : index
    %c0_113 = arith.constant 0 : index
    %241 = vector.load %arg2[%c0_112, %c0_113] : memref<128x512xf32, #tpu.memory_space<vmem>>, vector<128x512xf32>
    %cst_114 = arith.constant dense<0.000000e+00> : vector<8x512xf32>
    %242 = tpu.matmul %240, %241, %cst_114 {dimension_numbers = #tpu.dot_dimension_numbers<[1], [0], [0], [1], [0, 0, 1, 1], [], []>} : vector<8x128xf32>, vector<128x512xf32>, vector<8x512xf32> -> vector<8x512xf32>
    %243 = arith.addf %239, %242 : vector<8x512xf32>
    %244 = vector.extract_strided_slice %243 {offsets = [0, 0], sizes = [8, 128], strides = [1, 1]} : vector<8x512xf32> to vector<8x128xf32>
    %245 = arith.negf %244 : vector<8x128xf32>
    %246 = math.exp %245 : vector<8x128xf32>
    %cst_115 = arith.constant 1.000000e+00 : f32
    %247 = vector.broadcast %cst_115 : f32 to vector<8x128xf32>
    %248 = arith.addf %247, %246 : vector<8x128xf32>
    %249 = arith.divf %247, %248 : vector<8x128xf32>
    %250 = vector.extract_strided_slice %243 {offsets = [0, 128], sizes = [8, 128], strides = [1, 1]} : vector<8x512xf32> to vector<8x128xf32>
    %251 = arith.negf %250 : vector<8x128xf32>
    %252 = math.exp %251 : vector<8x128xf32>
    %cst_116 = arith.constant 1.000000e+00 : f32
    %253 = vector.broadcast %cst_116 : f32 to vector<8x128xf32>
    %254 = arith.addf %253, %252 : vector<8x128xf32>
    %255 = arith.divf %253, %254 : vector<8x128xf32>
    %256 = vector.extract_strided_slice %243 {offsets = [0, 256], sizes = [8, 128], strides = [1, 1]} : vector<8x512xf32> to vector<8x128xf32>
    %257 = math.tanh %256 : vector<8x128xf32>
    %258 = vector.extract_strided_slice %243 {offsets = [0, 384], sizes = [8, 128], strides = [1, 1]} : vector<8x512xf32> to vector<8x128xf32>
    %259 = arith.negf %258 : vector<8x128xf32>
    %260 = math.exp %259 : vector<8x128xf32>
    %cst_117 = arith.constant 1.000000e+00 : f32
    %261 = vector.broadcast %cst_117 : f32 to vector<8x128xf32>
    %262 = arith.addf %261, %260 : vector<8x128xf32>
    %263 = arith.divf %261, %262 : vector<8x128xf32>
    %c0_118 = arith.constant 0 : index
    %c0_119 = arith.constant 0 : index
    %264 = vector.load %arg5[%c0_118, %c0_119] : memref<8x128xf32, #tpu.memory_space<vmem>>, vector<8x128xf32>
    %265 = arith.mulf %255, %264 : vector<8x128xf32>
    %266 = arith.mulf %249, %257 : vector<8x128xf32>
    %267 = arith.addf %265, %266 : vector<8x128xf32>
    %268 = math.tanh %267 : vector<8x128xf32>
    %269 = arith.mulf %263, %268 : vector<8x128xf32>
    %c0_120 = arith.constant 0 : index
    %c0_121 = arith.constant 0 : index
    %270 = vector.load %arg5[%c0_120, %c0_121] : memref<8x128xf32, #tpu.memory_space<vmem>>, vector<8x128xf32>
    tpu.vector_store %arg5[%c0_120, %c0_121], %267 {strides = array<i32>} : memref<8x128xf32, #tpu.memory_space<vmem>>, vector<8x128xf32>,
    %c0_122 = arith.constant 0 : index
    %c0_123 = arith.constant 0 : index
    %271 = vector.load %arg4[%c0_122, %c0_123] : memref<8x128xf32, #tpu.memory_space<vmem>>, vector<8x128xf32>
    tpu.vector_store %arg4[%c0_122, %c0_123], %269 {strides = array<i32>} : memref<8x128xf32, #tpu.memory_space<vmem>>, vector<8x128xf32>,
    %272 = arith.index_cast %c6_i32 : i32 to index
    %c0_124 = arith.constant 0 : index
    %c0_125 = arith.constant 0 : index
    %273 = vector.load %arg3[%272, %c0_124, %c0_125] : memref<8x8x128xf32, #tpu.memory_space<vmem>>, vector<1x8x128xf32>
    %274 = vector.shape_cast %273 : vector<1x8x128xf32> to vector<8x128xf32>
    %275 = vector.shape_cast %269 : vector<8x128xf32> to vector<1x8x128xf32>
    tpu.vector_store %arg3[%272, %c0_124, %c0_125], %275 {strides = array<i32>} : memref<8x8x128xf32, #tpu.memory_space<vmem>>, vector<1x8x128xf32>,
    %c7_i32 = arith.constant 7 : i32
    %276 = arith.index_cast %c7_i32 : i32 to index
    %c0_126 = arith.constant 0 : index
    %c0_127 = arith.constant 0 : index
    %277 = vector.load %arg1[%276, %c0_126, %c0_127] : memref<8x8x512xf32, #tpu.memory_space<vmem>>, vector<1x8x512xf32>
    %278 = vector.shape_cast %277 : vector<1x8x512xf32> to vector<8x512xf32>
    %c0_128 = arith.constant 0 : index
    %c0_129 = arith.constant 0 : index
    %279 = vector.load %arg4[%c0_128, %c0_129] : memref<8x128xf32, #tpu.memory_space<vmem>>, vector<8x128xf32>
    %c0_130 = arith.constant 0 : index
    %c0_131 = arith.constant 0 : index
    %280 = vector.load %arg2[%c0_130, %c0_131] : memref<128x512xf32, #tpu.memory_space<vmem>>, vector<128x512xf32>
    %cst_132 = arith.constant dense<0.000000e+00> : vector<8x512xf32>
    %281 = tpu.matmul %279, %280, %cst_132 {dimension_numbers = #tpu.dot_dimension_numbers<[1], [0], [0], [1], [0, 0, 1, 1], [], []>} : vector<8x128xf32>, vector<128x512xf32>, vector<8x512xf32> -> vector<8x512xf32>
    %282 = arith.addf %278, %281 : vector<8x512xf32>
    %283 = vector.extract_strided_slice %282 {offsets = [0, 0], sizes = [8, 128], strides = [1, 1]} : vector<8x512xf32> to vector<8x128xf32>
    %284 = arith.negf %283 : vector<8x128xf32>
    %285 = math.exp %284 : vector<8x128xf32>
    %cst_133 = arith.constant 1.000000e+00 : f32
    %286 = vector.broadcast %cst_133 : f32 to vector<8x128xf32>
    %287 = arith.addf %286, %285 : vector<8x128xf32>
    %288 = arith.divf %286, %287 : vector<8x128xf32>
    %289 = vector.extract_strided_slice %282 {offsets = [0, 128], sizes = [8, 128], strides = [1, 1]} : vector<8x512xf32> to vector<8x128xf32>
    %290 = arith.negf %289 : vector<8x128xf32>
    %291 = math.exp %290 : vector<8x128xf32>
    %cst_134 = arith.constant 1.000000e+00 : f32
    %292 = vector.broadcast %cst_134 : f32 to vector<8x128xf32>
    %293 = arith.addf %292, %291 : vector<8x128xf32>
    %294 = arith.divf %292, %293 : vector<8x128xf32>
    %295 = vector.extract_strided_slice %282 {offsets = [0, 256], sizes = [8, 128], strides = [1, 1]} : vector<8x512xf32> to vector<8x128xf32>
    %296 = math.tanh %295 : vector<8x128xf32>
    %297 = vector.extract_strided_slice %282 {offsets = [0, 384], sizes = [8, 128], strides = [1, 1]} : vector<8x512xf32> to vector<8x128xf32>
    %298 = arith.negf %297 : vector<8x128xf32>
    %299 = math.exp %298 : vector<8x128xf32>
    %cst_135 = arith.constant 1.000000e+00 : f32
    %300 = vector.broadcast %cst_135 : f32 to vector<8x128xf32>
    %301 = arith.addf %300, %299 : vector<8x128xf32>
    %302 = arith.divf %300, %301 : vector<8x128xf32>
    %c0_136 = arith.constant 0 : index
    %c0_137 = arith.constant 0 : index
    %303 = vector.load %arg5[%c0_136, %c0_137] : memref<8x128xf32, #tpu.memory_space<vmem>>, vector<8x128xf32>
    %304 = arith.mulf %294, %303 : vector<8x128xf32>
    %305 = arith.mulf %288, %296 : vector<8x128xf32>
    %306 = arith.addf %304, %305 : vector<8x128xf32>
    %307 = math.tanh %306 : vector<8x128xf32>
    %308 = arith.mulf %302, %307 : vector<8x128xf32>
    %c0_138 = arith.constant 0 : index
    %c0_139 = arith.constant 0 : index
    %309 = vector.load %arg5[%c0_138, %c0_139] : memref<8x128xf32, #tpu.memory_space<vmem>>, vector<8x128xf32>
    tpu.vector_store %arg5[%c0_138, %c0_139], %306 {strides = array<i32>} : memref<8x128xf32, #tpu.memory_space<vmem>>, vector<8x128xf32>,
    %c0_140 = arith.constant 0 : index
    %c0_141 = arith.constant 0 : index
    %310 = vector.load %arg4[%c0_140, %c0_141] : memref<8x128xf32, #tpu.memory_space<vmem>>, vector<8x128xf32>
    tpu.vector_store %arg4[%c0_140, %c0_141], %308 {strides = array<i32>} : memref<8x128xf32, #tpu.memory_space<vmem>>, vector<8x128xf32>,
    %311 = arith.index_cast %c7_i32 : i32 to index
    %c0_142 = arith.constant 0 : index
    %c0_143 = arith.constant 0 : index
    %312 = vector.load %arg3[%311, %c0_142, %c0_143] : memref<8x8x128xf32, #tpu.memory_space<vmem>>, vector<1x8x128xf32>
    %313 = vector.shape_cast %312 : vector<1x8x128xf32> to vector<8x128xf32>
    %314 = vector.shape_cast %308 : vector<8x128xf32> to vector<1x8x128xf32>
    tpu.vector_store %arg3[%311, %c0_142, %c0_143], %314 {strides = array<i32>} : memref<8x8x128xf32, #tpu.memory_space<vmem>>, vector<1x8x128xf32>,
    %c8_i32 = arith.constant 8 : i32
    return
  }
  func.func @transform_0(%arg0: i32) -> (i32, i32, i32) {
    %c0_i32 = arith.constant 0 : i32
    %c0_i32_0 = arith.constant 0 : i32
    %c0_i32_1 = arith.constant 0 : i32
    return %arg0, %c0_i32, %c0_i32_0 : i32, i32, i32
  }
  func.func @transform_1(%arg0: i32) -> (i32, i32) {
    %c0_i32 = arith.constant 0 : i32
    %c0_i32_0 = arith.constant 0 : i32
    %c0_i32_1 = arith.constant 0 : i32
    return %c0_i32, %c0_i32_0 : i32, i32
  }
  func.func @transform_2(%arg0: i32) -> (i32, i32, i32) {
    %c0_i32 = arith.constant 0 : i32
    %c0_i32_0 = arith.constant 0 : i32
    %c0_i32_1 = arith.constant 0 : i32
    return %arg0, %c0_i32, %c0_i32_0 : i32, i32, i32
  }
}

</mosaic_0001>

<bundles_post_ra>
// kernel: tpu_custom_call.1
= control target key start
LH: loop header
LB: loop body
LE: loop exit
PB: predicated region body
PF: predicated region fallthrough
CT: control target
= control target key end

     0   :  { %7 = vsyncpa [#allocation5], 0  ;;  %s3246_s0 = inlined_call_operand.hbm [shape: f32[8,8,512], index: 0, kind: input, shape index: {}]   ;;  %s3247_s1 = inlined_call_operand.hbm [shape: f32[128,512], index: 1, kind: input, shape index: {}]   ;;  %s3248_s2 = inlined_call_operand.hbm [shape: f32[8,8,128], index: 2, kind: output, shape index: {}]  }
   0x1   :  { %8 = vsyncpa [#allocation8], 0 }
   0x2   :  { %9 = vsyncpa [#allocation6], 0  ;;  %s2766_s9 = smov [#allocation4]   ;;  %s2694_s13 = scalar_lea.hbm %s3246_s0, 4096 }
   0x3   :  { %s15_s10 = sshll.u32 %s2766_s9, 4  ;;  %p2695_p0 = scmp.ne.s32.totalorder %s3246_s0, %s2694_s13  ;;  %s16_s10 = int_to_ptr.vmem [resolvable:$true] %s15_s10 }
   0x4   :  { %p2698_p1 = scmp.lt.u32.totalorder %s2694_s13, %s3246_s0 }
   0x6   :  { %p2700_p2 = pnand %p2698_p1, %p2695_p0 }
   0x8   :  { %2703 = shalt.err (!%p2700_p2)
}
   0x9   :  { %s2704_s18 = scalar_lea.vmem %s16_s10, 4096  ;;  %p2709_p4 = scmp.lt.s32.totalorder %s16_s10, %s16_s10 }
   0xa   :  { %p2705_p3 = scmp.ne.s32.totalorder %s16_s10, %s2704_s18  ;;  %p2710_p5 = scmp.lt.s32.totalorder %s2704_s18, %s2704_s18 }
   0xc   :  { %p2711_p6 = por %p2710_p5, %p2709_p4 }
   0xe   :  { %p2712_p7 = pnand %p2711_p6, %p2705_p3 }
  0x10   :  { %2715 = shalt.err (!%p2712_p7)
}
  0x11   :  { %s2767_s19 = smov 512   ;;  %s2768_s20 = smov 32  }
  0x12   :  { %21 = dma.hbm_to_vmem [thread:$0]  %s3246_s0, 4096, %s16_s10, [#allocation5], %s2767_s19, %s2767_s19, %s2768_s20  }
  0x13   :  { %s2769_s23 = smov [#allocation7]   ;;  %s2716_s27 = scalar_lea.hbm %s3247_s1, 8192 }
  0x14   :  { %s27_s24 = sshll.u32 %s2769_s23, 4  ;;  %p2717_p8 = scmp.ne.s32.totalorder %s3247_s1, %s2716_s27  ;;  %s28_s24 = int_to_ptr.vmem [resolvable:$true] %s27_s24 }
  0x15   :  { %p2720_p9 = scmp.lt.u32.totalorder %s2716_s27, %s3247_s1 }
  0x17   :  { %p2722_p10 = pnand %p2720_p9, %p2717_p8 }
  0x19   :  { %2725 = shalt.err (!%p2722_p10)
}
  0x1a   :  { %s2726_s4 = scalar_lea.vmem %s28_s24, 8192  ;;  %p2731_p12 = scmp.lt.s32.totalorder %s28_s24, %s28_s24 }
  0x1b   :  { %p2727_p11 = scmp.ne.s32.totalorder %s28_s24, %s2726_s4  ;;  %p2732_p13 = scmp.lt.s32.totalorder %s2726_s4, %s2726_s4 }
  0x1d   :  { %p2733_p0 = por %p2732_p13, %p2731_p12 }
  0x1f   :  { %p2734_p1 = pnand %p2733_p0, %p2727_p11 }
  0x21   :  { %2737 = shalt.err (!%p2734_p1)
}
  0x22   :  { %33 = dma.hbm_to_vmem [thread:$0]  %s3247_s1, 8192, %s28_s24, [#allocation8], %s2767_s19, %s2767_s19, %s2768_s20  }
  0x23   :  { %2760 = dma.done.wait [#allocation5], 4096  }
  0x24   :  { %2761 = vsyncadd [#allocation5], 4294963200 }
  0x25   :  { %2762 = dma.done.wait [#allocation8], 8192  }
  0x26   :  { %2763 = vsyncadd [#allocation8], 4294959104  ;;  %v2770_v0 = vmov 0.0   ;;  %v52_v1 = vld [vmem:[#allocation7 + $0x8] sm:$0xff]  ;;  %v51_v3 = vld [vmem:[#allocation7] sm:$0xff]  ;;  %s2771_s1 = smov [#allocation9]  }
  0x27   :  { %179 = vmatprep.mubr.f32.mxu0 %v2770_v0  ;;  %250 = vmatprep.mubr.f32.mxu1 %v2770_v0  ;;  %v56_v2 = vld [vmem:[#allocation7 + $0x28] sm:$0xff]  ;;  %v55_v5 = vld [vmem:[#allocation7 + $0x20] sm:$0xff]  ;;  %v54_v19 = vld [vmem:[#allocation7 + $0x18] sm:$0xff]  ;;  %s2009_s6 = sshll.u32 %s2771_s1, 4  ;;  %s2010_s6 = int_to_ptr.vmem [resolvable:$true] %s2009_s6 }
  0x28   :  { %v2815_v4 = vpack.c.bf16 %v56_v2, %v52_v1  ;;  %v60_v6 = vld [vmem:[#allocation7 + $0x48] sm:$0xff]  ;;  %v2817_v8 = vpack.c.bf16 %v55_v5, %v51_v3  ;;  %v59_v10 = vld [vmem:[#allocation7 + $0x40] sm:$0xff]  ;;  %v58_v20 = vld [vmem:[#allocation7 + $0x38] sm:$0xff]  ;;  %s2738_s7 = scalar_lea.vmem %s2010_s6, 1024  ;;  %p2743_p3 = scmp.lt.s32.totalorder %s2010_s6, %s2010_s6 }
  0x29   :  { %v64_v7 = vld [vmem:[#allocation7 + $0x68] sm:$0xff]  ;;  %v63_v11 = vld [vmem:[#allocation7 + $0x60] sm:$0xff]  ;;  %v2828_v22 = vpack.c.bf16 %v58_v20, %v54_v19  ;;  %v53_v23 = vld [vmem:[#allocation7 + $0x10] sm:$0xff]  ;;  %p2739_p2 = scmp.ne.s32.totalorder %s2010_s6, %s2738_s7  ;;  %p2744_p4 = scmp.lt.s32.totalorder %s2738_s7, %s2738_s7 }
  0x2a   :  { %v2819_v9 = vpack.c.bf16 %v64_v7, %v60_v6  ;;  %v68_v12 = vld [vmem:[#allocation7 + $0x88] sm:$0xff]  ;;  %2047 = vmatprep.subr.bf16.mxu0 %v2815_v4  ;;  %v2823_v14 = vpack.c.bf16 %v63_v11, %v59_v10  ;;  %v67_v15 = vld [vmem:[#allocation7 + $0x80] sm:$0xff]  ;;  %v57_v24 = vld [vmem:[#allocation7 + $0x30] sm:$0xff] }
  0x2b   :  { %v72_v13 = vld [vmem:[#allocation7 + $0xa8] sm:$0xff]  ;;  %2049 = vmatpush1.bf16.msra.mxu0 %v2817_v8  ;;  %v71_v16 = vld [vmem:[#allocation7 + $0xa0] sm:$0xff]  ;;  %v2830_v25 = vpack.c.bf16 %v57_v24, %v53_v23  ;;  %2079 = vmatprep.subr.bf16.mxu1 %v2828_v22  ;;  %v62_v27 = vld [vmem:[#allocation7 + $0x58] sm:$0xff]  ;;  %p2745_p5 = por %p2744_p4, %p2743_p3 }
  0x2c   :  { %2051 = vmatprep.subr.bf16.mxu0 %v2819_v9  ;;  %v2826_v17 = vpack.c.bf16 %v72_v13, %v68_v12  ;;  %v76_v18 = vld [vmem:[#allocation7 + $0xc8] sm:$0xff]  ;;  %v2833_v26 = vpack.c.bf16 %v71_v16, %v67_v15  ;;  %v66_v28 = vld [vmem:[#allocation7 + $0x78] sm:$0xff]  ;;  %v61_v29 = vld [vmem:[#allocation7 + $0x50] sm:$0xff] }
  0x2d   :  { %v80_v21 = vld [vmem:[#allocation7 + $0xe8] sm:$0xff]  ;;  %v75_v31 = vld [vmem:[#allocation7 + $0xc0] sm:$0xff]  ;;  %2081 = vmatpush1.bf16.msra.mxu1 %v2830_v25  ;;  %v2840_v33 = vpack.c.bf16 %v66_v28, %v62_v27  ;;  %v65_v34 = vld [vmem:[#allocation7 + $0x70] sm:$0xff]  ;;  %p2746_p6 = pnand %p2745_p5, %p2739_p2 }
  0x2e   :  { %v2837_v30 = vpack.c.bf16 %v80_v21, %v76_v18  ;;  %v79_v32 = vld [vmem:[#allocation7 + $0xe0] sm:$0xff]  ;;  %v84_v35 = vld [vmem:[#allocation7 + $0x108] sm:$0xff]  ;;  %v2842_v37 = vpack.c.bf16 %v65_v34, %v61_v29  ;;  %v70_v38 = vld [vmem:[#allocation7 + $0x98] sm:$0xff] }
  0x2f   :  { %2053 = vmatpush1.bf16.msra.mxu0 %v2823_v14  ;;  %v88_v36 = vld [vmem:[#allocation7 + $0x128] sm:$0xff]  ;;  %2083 = vmatprep.subr.bf16.mxu1 %v2840_v33  ;;  %v74_v39 = vld [vmem:[#allocation7 + $0xb8] sm:$0xff]  ;;  %v69_v40 = vld [vmem:[#allocation7 + $0x90] sm:$0xff]  ;;  %v2846_v42 = vpack.c.bf16 %v79_v32, %v75_v31 }
  0x30   :  { %2055 = vmatprep.subr.bf16.mxu0 %v2826_v17  ;;  %v73_v41 = vld [vmem:[#allocation7 + $0xb0] sm:$0xff]  ;;  %v83_v43 = vld [vmem:[#allocation7 + $0x100] sm:$0xff]  ;;  %v2848_v45 = vpack.c.bf16 %v74_v39, %v70_v38  ;;  %v2851_v46 = vpack.c.bf16 %v88_v36, %v84_v35  ;;  %v92_v47 = vld [vmem:[#allocation7 + $0x148] sm:$0xff] }
  0x31   :  { %v87_v44 = vld [vmem:[#allocation7 + $0x120] sm:$0xff]  ;;  %2085 = vmatpush1.bf16.msra.mxu1 %v2842_v37  ;;  %v2854_v48 = vpack.c.bf16 %v73_v41, %v69_v40  ;;  %v78_v49 = vld [vmem:[#allocation7 + $0xd8] sm:$0xff]  ;;  %v96_v51 = vld [vmem:[#allocation7 + $0x168] sm:$0xff] }
  0x32   :  { %v82_v50 = vld [vmem:[#allocation7 + $0xf8] sm:$0xff]  ;;  %2087 = vmatprep.subr.bf16.mxu1 %v2848_v45  ;;  %v77_v53 = vld [vmem:[#allocation7 + $0xd0] sm:$0xff]  ;;  %v2860_v55 = vpack.c.bf16 %v87_v44, %v83_v43  ;;  %v2863_v58 = vpack.c.bf16 %v96_v51, %v92_v47  ;;  %v91_v59 = vld [vmem:[#allocation7 + $0x140] sm:$0xff] }
  0x33   :  { %2057 = vmatpush1.bf16.msra.mxu0 %v2833_v26  ;;  %v2857_v52 = vpack.c.bf16 %v82_v50, %v78_v49  ;;  %v81_v54 = vld [vmem:[#allocation7 + $0xf0] sm:$0xff]  ;;  %v86_v56 = vld [vmem:[#allocation7 + $0x118] sm:$0xff]  ;;  %v95_v60 = vld [vmem:[#allocation7 + $0x160] sm:$0xff] }
  0x34   :  { %2059 = vmatprep.subr.bf16.mxu0 %v2837_v30  ;;  %v90_v57 = vld [vmem:[#allocation7 + $0x138] sm:$0xff]  ;;  %v100_v61 = vld [vmem:[#allocation7 + $0x188] sm:$0xff]  ;;  %v2866_v62 = vpack.c.bf16 %v81_v54, %v77_v53  ;;  %v85_v2 = vld [vmem:[#allocation7 + $0x110] sm:$0xff]  ;;  %v2872_v7 = vpack.c.bf16 %v95_v60, %v91_v59 }
  0x35   :  { %2089 = vmatpush1.bf16.msra.mxu1 %v2854_v48  ;;  %v104_v63 = vld [vmem:[#allocation7 + $0x1a8] sm:$0xff]  ;;  %v2869_v1 = vpack.c.bf16 %v90_v57, %v86_v56  ;;  %v89_v3 = vld [vmem:[#allocation7 + $0x130] sm:$0xff]  ;;  %v94_v5 = vld [vmem:[#allocation7 + $0x158] sm:$0xff] }
  0x36   :  { %2091 = vmatprep.subr.bf16.mxu1 %v2857_v52  ;;  %v98_v6 = vld [vmem:[#allocation7 + $0x178] sm:$0xff]  ;;  %v2875_v10 = vpack.c.bf16 %v104_v63, %v100_v61  ;;  %v99_v11 = vld [vmem:[#allocation7 + $0x180] sm:$0xff]  ;;  %v108_v13 = vld [vmem:[#allocation7 + $0x1c8] sm:$0xff]  ;;  %v2878_v15 = vpack.c.bf16 %v89_v3, %v85_v2 }
  0x37   :  { %2061 = vmatpush1.bf16.msra.mxu0 %v2846_v42  ;;  %v103_v12 = vld [vmem:[#allocation7 + $0x1a0] sm:$0xff]  ;;  %v112_v16 = vld [vmem:[#allocation7 + $0x1e8] sm:$0xff]  ;;  %v2881_v18 = vpack.c.bf16 %v98_v6, %v94_v5  ;;  %v93_v19 = vld [vmem:[#allocation7 + $0x150] sm:$0xff] }
  0x38   :  { %2063 = vmatprep.subr.bf16.mxu0 %v2851_v46  ;;  %v97_v20 = vld [vmem:[#allocation7 + $0x170] sm:$0xff]  ;;  %v102_v21 = vld [vmem:[#allocation7 + $0x198] sm:$0xff]  ;;  %v2884_v24 = vpack.c.bf16 %v103_v12, %v99_v11  ;;  %v2887_v27 = vpack.c.bf16 %v112_v16, %v108_v13  ;;  %v107_v28 = vld [vmem:[#allocation7 + $0x1c0] sm:$0xff] }
  0x39   :  { %2093 = vmatpush1.bf16.msra.mxu1 %v2866_v62  ;;  %v106_v23 = vld [vmem:[#allocation7 + $0x1b8] sm:$0xff]  ;;  %v111_v29 = vld [vmem:[#allocation7 + $0x1e0] sm:$0xff]  ;;  %v2890_v31 = vpack.c.bf16 %v97_v20, %v93_v19  ;;  %v101_v34 = vld [vmem:[#allocation7 + $0x190] sm:$0xff] }
  0x3a   :  { %2095 = vmatprep.subr.bf16.mxu1 %v2869_v1  ;;  %v2893_v32 = vpack.c.bf16 %v106_v23, %v102_v21  ;;  %v105_v35 = vld [vmem:[#allocation7 + $0x1b0] sm:$0xff]  ;;  %v110_v36 = vld [vmem:[#allocation7 + $0x1d8] sm:$0xff]  ;;  %v2896_v39 = vpack.c.bf16 %v111_v29, %v107_v28  ;;  %v46_v49 = vld [vmem:[#allocation4] sm:$0xff] }
  0x3b   :  { %2065 = vmatpush1.bf16.msra.mxu0 %v2860_v55  ;;  %v114_v38 = vld [vmem:[#allocation7 + $0x1f8] sm:$0xff]  ;;  %v2900_v40 = vpack.c.bf16 %v105_v35, %v101_v34  ;;  %v109_v43 = vld [vmem:[#allocation7 + $0x1d0] sm:$0xff]  ;;  %v47_v50 = vld [vmem:[#allocation4 + $0x8] sm:$0xff] }
  0x3c   :  { %2067 = vmatprep.subr.bf16.mxu0 %v2863_v58  ;;  %v2903_v41 = vpack.c.bf16 %v114_v38, %v110_v36  ;;  %v113_v44 = vld [vmem:[#allocation7 + $0x1f0] sm:$0xff]  ;;  %v49_v60 = vld [vmem:[#allocation4 + $0x18] sm:$0xff] }
  0x3d   :  { %2097 = vmatpush1.bf16.msra.mxu1 %v2878_v15  ;;  %v2907_v47 = vpack.c.bf16 %v113_v44, %v109_v43  ;;  %v48_v3 = vld [vmem:[#allocation4 + $0x10] sm:$0xff] }
  0x3e   :  { %2099 = vmatprep.subr.bf16.mxu1 %v2881_v18 }
  0x3f   :  { %2069 = vmatpush1.bf16.msra.mxu0 %v2872_v7 }
  0x40   :  { %2071 = vmatprep.subr.bf16.mxu0 %v2875_v10 }
  0x41   :  { %2101 = vmatpush1.bf16.msra.mxu1 %v2890_v31 }
  0x42   :  { %2103 = vmatprep.subr.bf16.mxu1 %v2893_v32 }
  0x43   :  { %2073 = vmatpush1.bf16.msra.mxu0 %v2884_v24 }
  0x44   :  { %2075 = vmatprep.subr.bf16.mxu0 %v2887_v27 }
  0x45   :  { %2105 = vmatpush1.bf16.msra.mxu1 %v2900_v40 }
  0x46   :  { %2107 = vmatprep.subr.bf16.mxu1 %v2903_v41 }
  0x47   :  { %2077 = vmatpush1.bf16.msra.mxu0 %v2896_v39 }
  0x48   :  { %2111 = vmatprep.subr.bf16.mxu0 %v2815_v4 }
  0x49   :  { %2109 = vmatpush1.bf16.msra.mxu1 %v2907_v47 }
  0x4a   :  { %180 = vmatmul.mubr.f32.vlgmr.msra.gmra.mrb[0].mxu0 %v2770_v0  ;;  %2143 = vmatprep.subr.bf16.mxu1 %v2828_v22 }
  0x4b   :  { %2113 = vmatpush1.bf16.msra.mxu0 %v2817_v8  ;;  %423 = vmatprep.mubr.f32.mxu0 %v2770_v0 }
  0x4c   :  { %2115 = vmatprep.subr.bf16.mxu0 %v2819_v9  ;;  %251 = vmatmul.mubr.f32.vlgmr.msra.gmra.mrb[0].mxu1 %v2770_v0 }
  0x4d   :  { %2145 = vmatpush1.bf16.msra.mxu1 %v2830_v25  ;;  %494 = vmatprep.mubr.f32.mxu1 %v2770_v0 }
  0x4e   :  { %2147 = vmatprep.subr.bf16.mxu1 %v2840_v33 }
  0x4f   :  { %2117 = vmatpush1.bf16.msra.mxu0 %v2823_v14 }
  0x50   :  { %2119 = vmatprep.subr.bf16.mxu0 %v2826_v17 }
  0x51   :  { %2149 = vmatpush1.bf16.msra.mxu1 %v2842_v37 }
  0x52   :  { %2151 = vmatprep.subr.bf16.mxu1 %v2848_v45 }
  0x53   :  { %2121 = vmatpush1.bf16.msra.mxu0 %v2833_v26 }
  0x54   :  { %2123 = vmatprep.subr.bf16.mxu0 %v2837_v30 }
  0x55   :  { %2153 = vmatpush1.bf16.msra.mxu1 %v2854_v48 }
  0x56   :  { %2155 = vmatprep.subr.bf16.mxu1 %v2857_v52 }
  0x57   :  { %2125 = vmatpush1.bf16.msra.mxu0 %v2846_v42 }
  0x58   :  { %2127 = vmatprep.subr.bf16.mxu0 %v2851_v46 }
  0x59   :  { %2157 = vmatpush1.bf16.msra.mxu1 %v2866_v62 }
  0x5a   :  { %2159 = vmatprep.subr.bf16.mxu1 %v2869_v1 }
  0x5b   :  { %2129 = vmatpush1.bf16.msra.mxu0 %v2860_v55 }
  0x5c   :  { %2131 = vmatprep.subr.bf16.mxu0 %v2863_v58 }
  0x5d   :  { %2161 = vmatpush1.bf16.msra.mxu1 %v2878_v15 }
  0x5e   :  { %2163 = vmatprep.subr.bf16.mxu1 %v2881_v18 }
  0x5f   :  { %2133 = vmatpush1.bf16.msra.mxu0 %v2872_v7 }
  0x60   :  { %2135 = vmatprep.subr.bf16.mxu0 %v2875_v10 }
  0x61   :  { %2165 = vmatpush1.bf16.msra.mxu1 %v2890_v31 }
  0x62   :  { %2167 = vmatprep.subr.bf16.mxu1 %v2893_v32 }
  0x63   :  { %2137 = vmatpush1.bf16.msra.mxu0 %v2884_v24 }
  0x64   :  { %2139 = vmatprep.subr.bf16.mxu0 %v2887_v27 }
  0x65   :  { %2169 = vmatpush1.bf16.msra.mxu1 %v2900_v40 }
  0x66   :  { %2171 = vmatprep.subr.bf16.mxu1 %v2903_v41 }
  0x67   :  { %2141 = vmatpush1.bf16.msra.mxu0 %v2896_v39 }
  0x68   :  { %2175 = vmatprep.subr.bf16.mxu0 %v2815_v4 }
  0x69   :  { %2173 = vmatpush1.bf16.msra.mxu1 %v2907_v47 }
  0x6a   :  { %2207 = vmatprep.subr.bf16.mxu1 %v2828_v22 }
 0x11d   :  { %v181_v51 = vpop.f32.mrb[0].mxu0 }
 0x11e   :  { %v257_v53 = vadd.f32 %v181_v51, %v46_v49  ;;  %v183_v54 = vpop.f32.mrb[1].mxu0 }
 0x11f   :  { %v258_v56 = vadd.f32 %v183_v54, %v47_v50  ;;  %v252_v61 = vpop.f32.mrb[0].mxu1 }
 0x120   :  { %v2022_v57 = vmul.f32 -1.442695, %v257_v53  ;;  %v254_v63 = vpop.f32.mrb[1].mxu1  ;;  %v259_v6 = vadd.f32 %v252_v61, %v48_v3 }
 0x121   :  { %v2023_v59 = vmul.f32 -1.442695, %v258_v56  ;;  %v260_v2 = vadd.f32 %v254_v63, %v49_v60  ;;  %v293_v56 = vld [vmem:[#allocation4 + $0x38] sm:$0xff] }
 0x122   :  { %2566 = vpow2.f32 %v2022_v57  ;;  %v292_v57 = vld [vmem:[#allocation4 + $0x30] sm:$0xff] }
 0x123   :  { %2568 = vpow2.f32 %v2023_v59  ;;  %v2024_v5 = vmul.f32 -1.442695, %v260_v2 }
 0x125   :  { %2570 = vpow2.f32 %v2024_v5 }
 0x126   :  { %2572 = vtanh.f32 %v259_v6 }
 0x12c   :  { %v2567_v11 = vpop.eup %2566 }
 0x12d   :  { %v2569_v12 = vpop.eup %2568  ;;  %v264_v13 = vadd.f32 1.0, %v2567_v11 }
 0x12e   :  { %v270_v16 = vadd.f32 1.0, %v2569_v12 }
 0x12f   :  { %2574 = vrcp.f32 %v264_v13  ;;  %v2571_v19 = vpop.eup %2570 }
 0x130   :  { %2576 = vrcp.f32 %v270_v16  ;;  %v2573_v20 = vpop.eup %2572  ;;  %v277_v23 = vadd.f32 1.0, %v2571_v19 }
 0x132   :  { %2578 = vrcp.f32 %v277_v23 }
 0x139   :  { %v2575_v21 = vpop.eup %2574 }
 0x13a   :  { %v2577_v28 = vpop.eup %2576  ;;  %v282_v29 = vmul.f32 %v2575_v21, %v2573_v20 }
 0x13b   :  { %v281_v34 = vmul.f32 0.0, %v2577_v28  ;;  %v538_v28 = vld [vmem:[#allocation4 + $0x58] sm:$0xff] }
 0x13c   :  { %v2579_v36 = vpop.eup %2578 }
 0x13d   :  { %v2949_v35 = vadd.f32 %v282_v29, %v281_v34  ;;  %v537_v34 = vld [vmem:[#allocation4 + $0x50] sm:$0xff] }
 0x13f   :  { %2580 = vtanh.f32 %v2949_v35 }
 0x149   :  { %v2581_v38 = vpop.eup %2580 }
 0x14a   :  { %v285_v43 = vmul.f32 %v2581_v38, %v2579_v36 }
 0x14c   :  { %288 = vst [vmem:[#allocation9] sm:$0xff] %v285_v43  ;;  %424 = vmatmul.mubr.f32.vlgmr.msra.gmra.mrb[2].mxu0 %v285_v43  ;;  %495 = vmatmul.mubr.f32.vlgmr.msra.gmra.mrb[2].mxu1 %v285_v43 }
 0x14d   :  { %2177 = vmatpush1.bf16.msra.mxu0 %v2817_v8  ;;  %2209 = vmatpush1.bf16.msra.mxu1 %v2830_v25 }
 0x14e   :  { %2179 = vmatprep.subr.bf16.mxu0 %v2819_v9  ;;  %2211 = vmatprep.subr.bf16.mxu1 %v2840_v33 }
 0x14f   :  { %668 = vmatprep.mubr.f32.mxu0 %v2770_v0  ;;  %739 = vmatprep.mubr.f32.mxu1 %v2770_v0 }
 0x151   :  { %2181 = vmatpush1.bf16.msra.mxu0 %v2823_v14  ;;  %2213 = vmatpush1.bf16.msra.mxu1 %v2842_v37 }
 0x152   :  { %2183 = vmatprep.subr.bf16.mxu0 %v2826_v17  ;;  %2215 = vmatprep.subr.bf16.mxu1 %v2848_v45 }
 0x155   :  { %2185 = vmatpush1.bf16.msra.mxu0 %v2833_v26  ;;  %2217 = vmatpush1.bf16.msra.mxu1 %v2854_v48 }
 0x156   :  { %2187 = vmatprep.subr.bf16.mxu0 %v2837_v30  ;;  %2219 = vmatprep.subr.bf16.mxu1 %v2857_v52 }
 0x159   :  { %2189 = vmatpush1.bf16.msra.mxu0 %v2846_v42  ;;  %2221 = vmatpush1.bf16.msra.mxu1 %v2866_v62  ;;  %v290_v42 = vld [vmem:[#allocation4 + $0x20] sm:$0xff] }
 0x15a   :  { %2191 = vmatprep.subr.bf16.mxu0 %v2851_v46  ;;  %2223 = vmatprep.subr.bf16.mxu1 %v2869_v1 }
 0x15d   :  { %2193 = vmatpush1.bf16.msra.mxu0 %v2860_v55  ;;  %2225 = vmatpush1.bf16.msra.mxu1 %v2878_v15  ;;  %v291_v55 = vld [vmem:[#allocation4 + $0x28] sm:$0xff] }
 0x15e   :  { %2195 = vmatprep.subr.bf16.mxu0 %v2863_v58  ;;  %2227 = vmatprep.subr.bf16.mxu1 %v2881_v18 }
 0x161   :  { %2197 = vmatpush1.bf16.msra.mxu0 %v2872_v7  ;;  %2229 = vmatpush1.bf16.msra.mxu1 %v2890_v31 }
 0x162   :  { %2199 = vmatprep.subr.bf16.mxu0 %v2875_v10  ;;  %2231 = vmatprep.subr.bf16.mxu1 %v2893_v32 }
 0x165   :  { %2201 = vmatpush1.bf16.msra.mxu0 %v2884_v24  ;;  %2233 = vmatpush1.bf16.msra.mxu1 %v2900_v40 }
 0x166   :  { %2203 = vmatprep.subr.bf16.mxu0 %v2887_v27  ;;  %2235 = vmatprep.subr.bf16.mxu1 %v2903_v41 }
 0x169   :  { %2205 = vmatpush1.bf16.msra.mxu0 %v2896_v39  ;;  %2237 = vmatpush1.bf16.msra.mxu1 %v2907_v47 }
 0x16a   :  { %2239 = vmatprep.subr.bf16.mxu0 %v2815_v4  ;;  %2271 = vmatprep.subr.bf16.mxu1 %v2828_v22 }
 0x21f   :  { %v425_v7 = vpop.f32.mrb[2].mxu0  ;;  %v496_v44 = vpop.f32.mrb[2].mxu1 }
 0x220   :  { %v501_v49 = vadd.f32 %v425_v7, %v290_v42  ;;  %v427_v24 = vpop.f32.mrb[3].mxu0  ;;  %v498_v50 = vpop.f32.mrb[3].mxu1  ;;  %v503_v60 = vadd.f32 %v496_v44, %v292_v57  ;;  %v1031_v57 = vld [vmem:[#allocation7 + $0x8] sm:$0xff] }
 0x221   :  { %v502_v51 = vadd.f32 %v427_v24, %v291_v55  ;;  %v504_v39 = vadd.f32 %v498_v50, %v293_v56 }
 0x222   :  { %v2025_v53 = vmul.f32 -1.442695, %v501_v49 }
 0x223   :  { %v2026_v54 = vmul.f32 -1.442695, %v502_v51  ;;  %v2027_v59 = vmul.f32 -1.442695, %v504_v39 }
 0x224   :  { %2582 = vpow2.f32 %v2025_v53 }
 0x225   :  { %2584 = vpow2.f32 %v2026_v54 }
 0x226   :  { %2586 = vpow2.f32 %v2027_v59  ;;  %v1035_v59 = vld [vmem:[#allocation7 + $0x28] sm:$0xff] }
 0x227   :  { %2588 = vtanh.f32 %v503_v60  ;;  %v1033_v60 = vld [vmem:[#allocation7 + $0x18] sm:$0xff] }
 0x22e   :  { %v2583_v4 = vpop.eup %2582 }
 0x22f   :  { %v2585_v61 = vpop.eup %2584  ;;  %v508_v22 = vadd.f32 1.0, %v2583_v4  ;;  %v3038_v4 = vpack.c.bf16 %v1035_v59, %v1031_v57  ;;  %v1077_v59 = vld [vmem:[#allocation7 + $0x178] sm:$0xff] }
 0x230   :  { %v514_v63 = vadd.f32 1.0, %v2585_v61  ;;  %v2587_v2 = vpop.eup %2586  ;;  %v1037_v61 = vld [vmem:[#allocation7 + $0x38] sm:$0xff] }
 0x231   :  { %2590 = vrcp.f32 %v508_v22  ;;  %v2589_v3 = vpop.eup %2588  ;;  %v521_v12 = vadd.f32 1.0, %v2587_v2  ;;  %v1030_v22 = vld [vmem:[#allocation7] sm:$0xff]  ;;  %v3040_v2 = vpack.c.bf16 %v1037_v61, %v1033_v60  ;;  %v1072_v60 = vld [vmem:[#allocation7 + $0x150] sm:$0xff] }
 0x232   :  { %2592 = vrcp.f32 %v514_v63  ;;  %v1034_v63 = vld [vmem:[#allocation7 + $0x20] sm:$0xff]  ;;  %v1076_v61 = vld [vmem:[#allocation7 + $0x170] sm:$0xff] }
 0x233   :  { %2594 = vrcp.f32 %v521_v12  ;;  %v1039_v12 = vld [vmem:[#allocation7 + $0x48] sm:$0xff] }
 0x23b   :  { %v2591_v5 = vpop.eup %2590 }
 0x23c   :  { %v2593_v6 = vpop.eup %2592  ;;  %v526_v11 = vmul.f32 %v2591_v5, %v2589_v3  ;;  %v3042_v3 = vpack.c.bf16 %v1034_v63, %v1030_v22  ;;  %v1032_v5 = vld [vmem:[#allocation7 + $0x10] sm:$0xff]  ;;  %v3098_v63 = vpack.c.bf16 %v1076_v61, %v1072_v60 }
 0x23d   :  { %v525_v13 = vmul.f32 %v2593_v6, %v2949_v35  ;;  %v2595_v19 = vpop.eup %2594  ;;  %v1036_v6 = vld [vmem:[#allocation7 + $0x30] sm:$0xff] }
 0x23f   :  { %v2987_v16 = vadd.f32 %v526_v11, %v525_v13  ;;  %v3045_v11 = vpack.c.bf16 %v1036_v6, %v1032_v5  ;;  %v1043_v13 = vld [vmem:[#allocation7 + $0x68] sm:$0xff] }
 0x240   :  { %v1079_v5 = vld [vmem:[#allocation7 + $0x188] sm:$0xff] }
 0x241   :  { %2596 = vtanh.f32 %v2987_v16  ;;  %v1083_v6 = vld [vmem:[#allocation7 + $0x1a8] sm:$0xff] }
 0x24b   :  { %v2597_v20 = vpop.eup %2596 }
 0x24c   :  { %v529_v21 = vmul.f32 %v2597_v20, %v2595_v19  ;;  %v3050_v19 = vpack.c.bf16 %v1043_v13, %v1039_v12  ;;  %v1045_v20 = vld [vmem:[#allocation7 + $0x78] sm:$0xff]  ;;  %v3101_v13 = vpack.c.bf16 %v1083_v6, %v1079_v5 }
 0x24d   :  { %v1081_v12 = vld [vmem:[#allocation7 + $0x198] sm:$0xff] }
 0x24e   :  { %533 = vst [vmem:[#allocation9 + $0x8] sm:$0xff] %v529_v21  ;;  %669 = vmatmul.mubr.f32.vlgmr.msra.gmra.mrb[4].mxu0 %v529_v21  ;;  %740 = vmatmul.mubr.f32.vlgmr.msra.gmra.mrb[4].mxu1 %v529_v21  ;;  %v1038_v21 = vld [vmem:[#allocation7 + $0x40] sm:$0xff] }
 0x24f   :  { %2241 = vmatpush1.bf16.msra.mxu0 %v2817_v8  ;;  %2273 = vmatpush1.bf16.msra.mxu1 %v2830_v25  ;;  %v809_v8 = vld [vmem:[#allocation7 + $0xc0] sm:$0xff] }
 0x250   :  { %2243 = vmatprep.subr.bf16.mxu0 %v2819_v9  ;;  %2275 = vmatprep.subr.bf16.mxu1 %v2840_v33  ;;  %v813_v9 = vld [vmem:[#allocation7 + $0xe0] sm:$0xff] }
 0x251   :  { %913 = vmatprep.mubr.f32.mxu0 %v2770_v0  ;;  %984 = vmatprep.mubr.f32.mxu1 %v2770_v0  ;;  %v821_v25 = vld [vmem:[#allocation7 + $0x120] sm:$0xff] }
 0x252   :  { %v829_v33 = vld [vmem:[#allocation7 + $0x160] sm:$0xff] }
 0x253   :  { %2245 = vmatpush1.bf16.msra.mxu0 %v2823_v14  ;;  %2277 = vmatpush1.bf16.msra.mxu1 %v2842_v37  ;;  %v3013_v14 = vpack.c.bf16 %v813_v9, %v809_v8  ;;  %v1042_v8 = vld [vmem:[#allocation7 + $0x60] sm:$0xff] }
 0x254   :  { %2247 = vmatprep.subr.bf16.mxu0 %v2826_v17  ;;  %2279 = vmatprep.subr.bf16.mxu1 %v2848_v45  ;;  %v817_v17 = vld [vmem:[#allocation7 + $0x100] sm:$0xff] }
 0x255   :  { %v833_v45 = vld [vmem:[#allocation7 + $0x180] sm:$0xff] }
 0x257   :  { %2249 = vmatpush1.bf16.msra.mxu0 %v2833_v26  ;;  %2281 = vmatpush1.bf16.msra.mxu1 %v2854_v48  ;;  %v3017_v26 = vpack.c.bf16 %v821_v25, %v817_v17  ;;  %v837_v48 = vld [vmem:[#allocation7 + $0x1a0] sm:$0xff]  ;;  %v3054_v17 = vpack.c.bf16 %v1042_v8, %v1038_v21  ;;  %v1040_v25 = vld [vmem:[#allocation7 + $0x50] sm:$0xff] }
 0x258   :  { %2251 = vmatprep.subr.bf16.mxu0 %v2837_v30  ;;  %2283 = vmatprep.subr.bf16.mxu1 %v2857_v52  ;;  %v825_v30 = vld [vmem:[#allocation7 + $0x140] sm:$0xff]  ;;  %v3024_v52 = vpack.c.bf16 %v837_v48, %v833_v45  ;;  %v1047_v45 = vld [vmem:[#allocation7 + $0x88] sm:$0xff]  ;;  %v1084_v21 = vld [vmem:[#allocation7 + $0x1b0] sm:$0xff] }
 0x259   :  { %v3020_v37 = vpack.c.bf16 %v829_v33, %v825_v30  ;;  %v1044_v30 = vld [vmem:[#allocation7 + $0x70] sm:$0xff]  ;;  %v1051_v48 = vld [vmem:[#allocation7 + $0xa8] sm:$0xff] }
 0x25a   :  { %v3057_v33 = vpack.c.bf16 %v1044_v30, %v1040_v25  ;;  %v1087_v25 = vld [vmem:[#allocation7 + $0x1c8] sm:$0xff] }
 0x25b   :  { %2285 = vmatpush1.bf16.msra.mxu1 %v2866_v62  ;;  %2253 = vmatpush1.bf16.msra.mxu0 %v3013_v14  ;;  %v845_v62 = vld [vmem:[#allocation7 + $0x1e0] sm:$0xff]  ;;  %v1091_v30 = vld [vmem:[#allocation7 + $0x1e8] sm:$0xff] }
 0x25c   :  { %2287 = vmatprep.subr.bf16.mxu1 %v2869_v1  ;;  %2255 = vmatprep.subr.bf16.mxu0 %v2851_v46  ;;  %v841_v46 = vld [vmem:[#allocation7 + $0x1c0] sm:$0xff] }
 0x25d   :  { %v3028_v1 = vpack.c.bf16 %v845_v62, %v841_v46  ;;  %v1049_v46 = vld [vmem:[#allocation7 + $0x98] sm:$0xff]  ;;  %v3062_v62 = vpack.c.bf16 %v1051_v48, %v1047_v45 }
 0x25e   :  { %v1089_v45 = vld [vmem:[#allocation7 + $0x1d8] sm:$0xff] }
 0x25f   :  { %2289 = vmatpush1.bf16.msra.mxu1 %v2878_v15  ;;  %2257 = vmatpush1.bf16.msra.mxu0 %v3017_v26  ;;  %v535_v15 = vld [vmem:[#allocation4 + $0x40] sm:$0xff]  ;;  %v1093_v48 = vld [vmem:[#allocation7 + $0x1f8] sm:$0xff] }
 0x260   :  { %2291 = vmatprep.subr.bf16.mxu1 %v2881_v18  ;;  %2259 = vmatprep.subr.bf16.mxu0 %v2863_v58  ;;  %v536_v58 = vld [vmem:[#allocation4 + $0x48] sm:$0xff] }
 0x263   :  { %2293 = vmatpush1.bf16.msra.mxu1 %v2890_v31  ;;  %2261 = vmatpush1.bf16.msra.mxu0 %v3020_v37 }
 0x264   :  { %2295 = vmatprep.subr.bf16.mxu1 %v2893_v32  ;;  %2263 = vmatprep.subr.bf16.mxu0 %v2875_v10 }
 0x267   :  { %2297 = vmatpush1.bf16.msra.mxu1 %v2900_v40  ;;  %2265 = vmatpush1.bf16.msra.mxu0 %v3024_v52 }
 0x268   :  { %2299 = vmatprep.subr.bf16.mxu1 %v2903_v41  ;;  %2267 = vmatprep.subr.bf16.mxu0 %v2887_v27 }
 0x26b   :  { %2301 = vmatpush1.bf16.msra.mxu1 %v2907_v47  ;;  %2269 = vmatpush1.bf16.msra.mxu0 %v3028_v1 }
 0x26c   :  { %2303 = vmatprep.subr.bf16.mxu0 %v3038_v4  ;;  %2335 = vmatprep.subr.bf16.mxu1 %v3040_v2 }
 0x321   :  { %v670_v18 = vpop.f32.mrb[4].mxu0  ;;  %v741_v31 = vpop.f32.mrb[4].mxu1 }
 0x322   :  { %v746_v32 = vadd.f32 %v670_v18, %v535_v15  ;;  %v672_v40 = vpop.f32.mrb[5].mxu0  ;;  %v743_v41 = vpop.f32.mrb[5].mxu1  ;;  %v748_v36 = vadd.f32 %v741_v31, %v537_v34  ;;  %v1053_v15 = vld [vmem:[#allocation7 + $0xb8] sm:$0xff]  ;;  %v1050_v18 = vld [vmem:[#allocation7 + $0xa0] sm:$0xff] }
 0x323   :  { %v747_v47 = vadd.f32 %v672_v40, %v536_v58  ;;  %v749_v29 = vadd.f32 %v743_v41, %v538_v28  ;;  %v1046_v58 = vld [vmem:[#allocation7 + $0x80] sm:$0xff]  ;;  %v3064_v31 = vpack.c.bf16 %v1053_v15, %v1049_v46  ;;  %v1048_v40 = vld [vmem:[#allocation7 + $0x90] sm:$0xff]  ;;  %v1057_v28 = vld [vmem:[#allocation7 + $0xd8] sm:$0xff]  ;;  %v3111_v15 = vpack.c.bf16 %v1091_v30, %v1087_v25 }
 0x324   :  { %v2028_v23 = vmul.f32 -1.442695, %v746_v32  ;;  %v3066_v32 = vpack.c.bf16 %v1050_v18, %v1046_v58  ;;  %v1052_v41 = vld [vmem:[#allocation7 + $0xb0] sm:$0xff]  ;;  %v1061_v34 = vld [vmem:[#allocation7 + $0xf8] sm:$0xff]  ;;  %v3114_v58 = vpack.c.bf16 %v1093_v48, %v1089_v45 }
 0x325   :  { %v2029_v10 = vmul.f32 -1.442695, %v747_v47  ;;  %v2030_v35 = vmul.f32 -1.442695, %v749_v29  ;;  %v3069_v47 = vpack.c.bf16 %v1052_v41, %v1048_v40  ;;  %v1088_v18 = vld [vmem:[#allocation7 + $0x1d0] sm:$0xff] }
 0x326   :  { %2598 = vpow2.f32 %v2028_v23  ;;  %v1055_v23 = vld [vmem:[#allocation7 + $0xc8] sm:$0xff]  ;;  %v1092_v40 = vld [vmem:[#allocation7 + $0x1f0] sm:$0xff] }
 0x327   :  { %2600 = vpow2.f32 %v2029_v10  ;;  %v1059_v10 = vld [vmem:[#allocation7 + $0xe8] sm:$0xff]  ;;  %v3119_v41 = vpack.c.bf16 %v1092_v40, %v1088_v18 }
 0x328   :  { %2602 = vpow2.f32 %v2030_v35  ;;  %v3074_v29 = vpack.c.bf16 %v1059_v10, %v1055_v23  ;;  %v1056_v35 = vld [vmem:[#allocation7 + $0xd0] sm:$0xff]  ;;  %v780_v23 = vld [vmem:[#allocation4 + $0x60] sm:$0xff]  ;;  %v781_v10 = vld [vmem:[#allocation4 + $0x68] sm:$0xff] }
 0x329   :  { %2604 = vtanh.f32 %v748_v36  ;;  %v1060_v36 = vld [vmem:[#allocation7 + $0xf0] sm:$0xff] }
 0x330   :  { %v2599_v27 = vpop.eup %2598 }
 0x331   :  { %v2601_v38 = vpop.eup %2600  ;;  %v753_v43 = vadd.f32 1.0, %v2599_v27  ;;  %v3076_v27 = vpack.c.bf16 %v1061_v34, %v1057_v28 }
 0x332   :  { %v759_v42 = vadd.f32 1.0, %v2601_v38  ;;  %v2603_v55 = vpop.eup %2602  ;;  %v3078_v38 = vpack.c.bf16 %v1060_v36, %v1056_v35 }
 0x333   :  { %2606 = vrcp.f32 %v753_v43  ;;  %v2605_v7 = vpop.eup %2604  ;;  %v766_v50 = vadd.f32 1.0, %v2603_v55  ;;  %v1063_v43 = vld [vmem:[#allocation7 + $0x108] sm:$0xff]  ;;  %v1065_v55 = vld [vmem:[#allocation7 + $0x118] sm:$0xff] }
 0x334   :  { %2608 = vrcp.f32 %v759_v42  ;;  %v1067_v42 = vld [vmem:[#allocation7 + $0x128] sm:$0xff] }
 0x335   :  { %2610 = vrcp.f32 %v766_v50 }
 0x33d   :  { %v2607_v44 = vpop.eup %2606 }
 0x33e   :  { %v2609_v49 = vpop.eup %2608  ;;  %v771_v24 = vmul.f32 %v2607_v44, %v2605_v7  ;;  %v3084_v7 = vpack.c.bf16 %v1067_v42, %v1063_v43  ;;  %v1069_v44 = vld [vmem:[#allocation7 + $0x138] sm:$0xff] }
 0x33f   :  { %v770_v51 = vmul.f32 %v2609_v49, %v2987_v16  ;;  %v2611_v54 = vpop.eup %2610  ;;  %v1041_v16 = vld [vmem:[#allocation7 + $0x58] sm:$0xff]  ;;  %v1064_v49 = vld [vmem:[#allocation7 + $0x110] sm:$0xff]  ;;  %v3086_v50 = vpack.c.bf16 %v1069_v44, %v1065_v55 }
 0x340   :  { %v3052_v9 = vpack.c.bf16 %v1045_v20, %v1041_v16  ;;  %v1085_v16 = vld [vmem:[#allocation7 + $0x1b8] sm:$0xff]  ;;  %v1080_v20 = vld [vmem:[#allocation7 + $0x190] sm:$0xff] }
 0x341   :  { %v3033_v53 = vadd.f32 %v771_v24, %v770_v51  ;;  %v1068_v24 = vld [vmem:[#allocation7 + $0x130] sm:$0xff]  ;;  %v3104_v8 = vpack.c.bf16 %v1085_v16, %v1081_v12  ;;  %v3109_v46 = vpack.c.bf16 %v1084_v21, %v1080_v20 }
 0x342   :  { %v3088_v51 = vpack.c.bf16 %v1068_v24, %v1064_v49  ;;  %v783_v49 = vld [vmem:[#allocation4 + $0x78] sm:$0xff] }
 0x343   :  { %2612 = vtanh.f32 %v3033_v53 }
 0x34d   :  { %v2613_v56 = vpop.eup %2612 }
 0x34e   :  { %v774_v39 = vmul.f32 %v2613_v56, %v2611_v54  ;;  %v1071_v54 = vld [vmem:[#allocation7 + $0x148] sm:$0xff] }
 0x34f   :  { %v1075_v56 = vld [vmem:[#allocation7 + $0x168] sm:$0xff] }
 0x350   :  { %778 = vst [vmem:[#allocation9 + $0x10] sm:$0xff] %v774_v39  ;;  %914 = vmatmul.mubr.f32.vlgmr.msra.gmra.mrb[6].mxu0 %v774_v39  ;;  %985 = vmatmul.mubr.f32.vlgmr.msra.gmra.mrb[6].mxu1 %v774_v39  ;;  %v1073_v39 = vld [vmem:[#allocation7 + $0x158] sm:$0xff]  ;;  %v3093_v57 = vpack.c.bf16 %v1075_v56, %v1071_v54  ;;  %v782_v54 = vld [vmem:[#allocation4 + $0x70] sm:$0xff] }
 0x351   :  { %1158 = vmatprep.mubr.f32.mxu0 %v2770_v0  ;;  %1229 = vmatprep.mubr.f32.mxu1 %v2770_v0  ;;  %v3096_v22 = vpack.c.bf16 %v1077_v59, %v1073_v39 }
 0x352   :  { %2305 = vmatpush1.bf16.msra.mxu0 %v3042_v3  ;;  %2337 = vmatpush1.bf16.msra.mxu1 %v3045_v11 }
 0x353   :  { %2307 = vmatprep.subr.bf16.mxu0 %v3050_v19  ;;  %2339 = vmatprep.subr.bf16.mxu1 %v3052_v9 }
 0x356   :  { %2309 = vmatpush1.bf16.msra.mxu0 %v3054_v17  ;;  %2341 = vmatpush1.bf16.msra.mxu1 %v3057_v33 }
 0x357   :  { %2311 = vmatprep.subr.bf16.mxu0 %v3062_v62  ;;  %2343 = vmatprep.subr.bf16.mxu1 %v3064_v31 }
 0x35a   :  { %2313 = vmatpush1.bf16.msra.mxu0 %v3066_v32  ;;  %2345 = vmatpush1.bf16.msra.mxu1 %v3069_v47 }
 0x35b   :  { %2315 = vmatprep.subr.bf16.mxu0 %v3074_v29  ;;  %2347 = vmatprep.subr.bf16.mxu1 %v3076_v27 }
 0x35e   :  { %2317 = vmatpush1.bf16.msra.mxu0 %v3013_v14  ;;  %2349 = vmatpush1.bf16.msra.mxu1 %v3078_v38 }
 0x35f   :  { %2319 = vmatprep.subr.bf16.mxu0 %v3084_v7  ;;  %2351 = vmatprep.subr.bf16.mxu1 %v3086_v50 }
 0x362   :  { %2321 = vmatpush1.bf16.msra.mxu0 %v3017_v26  ;;  %2353 = vmatpush1.bf16.msra.mxu1 %v3088_v51 }
 0x363   :  { %2323 = vmatprep.subr.bf16.mxu0 %v3093_v57  ;;  %2355 = vmatprep.subr.bf16.mxu1 %v3096_v22 }
 0x366   :  { %2325 = vmatpush1.bf16.msra.mxu0 %v3020_v37  ;;  %2357 = vmatpush1.bf16.msra.mxu1 %v3098_v63 }
 0x367   :  { %2327 = vmatprep.subr.bf16.mxu0 %v3101_v13  ;;  %2359 = vmatprep.subr.bf16.mxu1 %v3104_v8 }
 0x36a   :  { %2329 = vmatpush1.bf16.msra.mxu0 %v3024_v52  ;;  %2361 = vmatpush1.bf16.msra.mxu1 %v3109_v46 }
 0x36b   :  { %2331 = vmatprep.subr.bf16.mxu0 %v3111_v15  ;;  %2363 = vmatprep.subr.bf16.mxu1 %v3114_v58 }
 0x36e   :  { %2333 = vmatpush1.bf16.msra.mxu0 %v3028_v1  ;;  %2365 = vmatpush1.bf16.msra.mxu1 %v3119_v41 }
 0x36f   :  { %2367 = vmatprep.subr.bf16.mxu0 %v3038_v4  ;;  %2399 = vmatprep.subr.bf16.mxu1 %v3040_v2 }
 0x423   :  { %v915_v28 = vpop.f32.mrb[6].mxu0  ;;  %v986_v34 = vpop.f32.mrb[6].mxu1 }
 0x424   :  { %v991_v35 = vadd.f32 %v915_v28, %v780_v23  ;;  %v917_v36 = vpop.f32.mrb[7].mxu0  ;;  %v988_v43 = vpop.f32.mrb[7].mxu1  ;;  %v993_v39 = vadd.f32 %v986_v34, %v782_v54  ;;  %v1026_v23 = vld [vmem:[#allocation4 + $0x88] sm:$0xff] }
 0x425   :  { %v992_v42 = vadd.f32 %v917_v36, %v781_v10  ;;  %v994_v24 = vadd.f32 %v988_v43, %v783_v49 }
 0x426   :  { %v2031_v55 = vmul.f32 -1.442695, %v991_v35 }
 0x427   :  { %v2032_v44 = vmul.f32 -1.442695, %v992_v42  ;;  %v2033_v56 = vmul.f32 -1.442695, %v994_v24  ;;  %v1027_v24 = vld [vmem:[#allocation4 + $0x90] sm:$0xff] }
 0x428   :  { %2614 = vpow2.f32 %v2031_v55 }
 0x429   :  { %2616 = vpow2.f32 %v2032_v44  ;;  %v1028_v44 = vld [vmem:[#allocation4 + $0x98] sm:$0xff] }
 0x42a   :  { %2618 = vpow2.f32 %v2033_v56 }
 0x42b   :  { %2620 = vtanh.f32 %v993_v39 }
 0x432   :  { %v2615_v59 = vpop.eup %2614 }
 0x433   :  { %v2617_v60 = vpop.eup %2616  ;;  %v998_v61 = vadd.f32 1.0, %v2615_v59 }
 0x434   :  { %v1004_v5 = vadd.f32 1.0, %v2617_v60  ;;  %v2619_v6 = vpop.eup %2618 }
 0x435   :  { %2622 = vrcp.f32 %v998_v61  ;;  %v2621_v12 = vpop.eup %2620  ;;  %v1011_v25 = vadd.f32 1.0, %v2619_v6 }
 0x436   :  { %2624 = vrcp.f32 %v1004_v5 }
 0x437   :  { %2626 = vrcp.f32 %v1011_v25 }
 0x43f   :  { %v2623_v16 = vpop.eup %2622 }
 0x440   :  { %v2625_v20 = vpop.eup %2624  ;;  %v1016_v21 = vmul.f32 %v2623_v16, %v2621_v12 }
 0x441   :  { %v1015_v30 = vmul.f32 %v2625_v20, %v3033_v53  ;;  %v2627_v48 = vpop.eup %2626  ;;  %v1025_v53 = vld [vmem:[#allocation4 + $0x80] sm:$0xff] }
 0x443   :  { %v3127_v45 = vadd.f32 %v1016_v21, %v1015_v30 }
 0x445   :  { %2628 = vtanh.f32 %v3127_v45 }
 0x44f   :  { %v2629_v18 = vpop.eup %2628 }
 0x450   :  { %v1019_v40 = vmul.f32 %v2629_v18, %v2627_v48 }
 0x452   :  { %1023 = vst [vmem:[#allocation9 + $0x18] sm:$0xff] %v1019_v40  ;;  %1159 = vmatmul.mubr.f32.vlgmr.msra.gmra.mrb[8].mxu0 %v1019_v40  ;;  %1230 = vmatmul.mubr.f32.vlgmr.msra.gmra.mrb[8].mxu1 %v1019_v40 }
 0x453   :  { %2369 = vmatpush1.bf16.msra.mxu0 %v3042_v3  ;;  %2401 = vmatpush1.bf16.msra.mxu1 %v3045_v11 }
 0x454   :  { %2371 = vmatprep.subr.bf16.mxu0 %v3050_v19  ;;  %2403 = vmatprep.subr.bf16.mxu1 %v3052_v9 }
 0x455   :  { %1403 = vmatprep.mubr.f32.mxu0 %v2770_v0  ;;  %1474 = vmatprep.mubr.f32.mxu1 %v2770_v0 }
 0x457   :  { %2373 = vmatpush1.bf16.msra.mxu0 %v3054_v17  ;;  %2405 = vmatpush1.bf16.msra.mxu1 %v3057_v33 }
 0x458   :  { %2375 = vmatprep.subr.bf16.mxu0 %v3062_v62  ;;  %2407 = vmatprep.subr.bf16.mxu1 %v3064_v31 }
 0x45b   :  { %2377 = vmatpush1.bf16.msra.mxu0 %v3066_v32  ;;  %2409 = vmatpush1.bf16.msra.mxu1 %v3069_v47 }
 0x45c   :  { %2379 = vmatprep.subr.bf16.mxu0 %v3074_v29  ;;  %2411 = vmatprep.subr.bf16.mxu1 %v3076_v27 }
 0x45f   :  { %2381 = vmatpush1.bf16.msra.mxu0 %v3013_v14  ;;  %2413 = vmatpush1.bf16.msra.mxu1 %v3078_v38 }
 0x460   :  { %2383 = vmatprep.subr.bf16.mxu0 %v3084_v7  ;;  %2415 = vmatprep.subr.bf16.mxu1 %v3086_v50 }
 0x463   :  { %2385 = vmatpush1.bf16.msra.mxu0 %v3017_v26  ;;  %2417 = vmatpush1.bf16.msra.mxu1 %v3088_v51 }
 0x464   :  { %2387 = vmatprep.subr.bf16.mxu0 %v3093_v57  ;;  %2419 = vmatprep.subr.bf16.mxu1 %v3096_v22 }
 0x467   :  { %2389 = vmatpush1.bf16.msra.mxu0 %v3020_v37  ;;  %2421 = vmatpush1.bf16.msra.mxu1 %v3098_v63 }
 0x468   :  { %2391 = vmatprep.subr.bf16.mxu0 %v3101_v13  ;;  %2423 = vmatprep.subr.bf16.mxu1 %v3104_v8 }
 0x46b   :  { %2393 = vmatpush1.bf16.msra.mxu0 %v3024_v52  ;;  %2425 = vmatpush1.bf16.msra.mxu1 %v3109_v46 }
 0x46c   :  { %2395 = vmatprep.subr.bf16.mxu0 %v3111_v15  ;;  %2427 = vmatprep.subr.bf16.mxu1 %v3114_v58 }
 0x46f   :  { %2397 = vmatpush1.bf16.msra.mxu0 %v3028_v1  ;;  %2429 = vmatpush1.bf16.msra.mxu1 %v3119_v41 }
 0x470   :  { %2431 = vmatprep.subr.bf16.mxu0 %v3038_v4  ;;  %2463 = vmatprep.subr.bf16.mxu1 %v3040_v2 }
 0x525   :  { %v1160_v10 = vpop.f32.mrb[8].mxu0  ;;  %v1231_v28 = vpop.f32.mrb[8].mxu1 }
 0x526   :  { %v1236_v34 = vadd.f32 %v1160_v10, %v1025_v53  ;;  %v1162_v35 = vpop.f32.mrb[9].mxu0  ;;  %v1233_v36 = vpop.f32.mrb[9].mxu1  ;;  %v1238_v56 = vadd.f32 %v1231_v28, %v1027_v24 }
 0x527   :  { %v1237_v43 = vadd.f32 %v1162_v35, %v1026_v23  ;;  %v1239_v49 = vadd.f32 %v1233_v36, %v1028_v44  ;;  %v1273_v35 = vld [vmem:[#allocation4 + $0xb8] sm:$0xff]  ;;  %v1272_v36 = vld [vmem:[#allocation4 + $0xb0] sm:$0xff] }
 0x528   :  { %v2034_v42 = vmul.f32 -1.442695, %v1236_v34 }
 0x529   :  { %v2035_v55 = vmul.f32 -1.442695, %v1237_v43  ;;  %v2036_v54 = vmul.f32 -1.442695, %v1239_v49 }
 0x52a   :  { %2630 = vpow2.f32 %v2034_v42 }
 0x52b   :  { %2632 = vpow2.f32 %v2035_v55 }
 0x52c   :  { %2634 = vpow2.f32 %v2036_v54 }
 0x52d   :  { %2636 = vtanh.f32 %v1238_v56 }
 0x534   :  { %v2631_v39 = vpop.eup %2630 }
 0x535   :  { %v2633_v59 = vpop.eup %2632  ;;  %v1243_v60 = vadd.f32 1.0, %v2631_v39 }
 0x536   :  { %v1249_v61 = vadd.f32 1.0, %v2633_v59  ;;  %v2635_v5 = vpop.eup %2634 }
 0x537   :  { %2638 = vrcp.f32 %v1243_v60  ;;  %v2637_v6 = vpop.eup %2636  ;;  %v1256_v21 = vadd.f32 1.0, %v2635_v5 }
 0x538   :  { %2640 = vrcp.f32 %v1249_v61 }
 0x539   :  { %2642 = vrcp.f32 %v1256_v21  ;;  %v1517_v21 = vld [vmem:[#allocation4 + $0xd0] sm:$0xff] }
 0x541   :  { %v2639_v12 = vpop.eup %2638 }
 0x542   :  { %v2641_v16 = vpop.eup %2640  ;;  %v1261_v20 = vmul.f32 %v2639_v12, %v2637_v6 }
 0x543   :  { %v1260_v25 = vmul.f32 %v2641_v16, %v3127_v45  ;;  %v2643_v48 = vpop.eup %2642 }
 0x545   :  { %v3165_v30 = vadd.f32 %v1261_v20, %v1260_v25  ;;  %v1518_v20 = vld [vmem:[#allocation4 + $0xd8] sm:$0xff] }
 0x547   :  { %2644 = vtanh.f32 %v3165_v30 }
 0x551   :  { %v2645_v18 = vpop.eup %2644 }
 0x552   :  { %v1264_v40 = vmul.f32 %v2645_v18, %v2643_v48 }
 0x554   :  { %1268 = vst [vmem:[#allocation9 + $0x20] sm:$0xff] %v1264_v40  ;;  %1404 = vmatmul.mubr.f32.vlgmr.msra.gmra.mrb[10].mxu0 %v1264_v40  ;;  %1475 = vmatmul.mubr.f32.vlgmr.msra.gmra.mrb[10].mxu1 %v1264_v40 }
 0x555   :  { %2433 = vmatpush1.bf16.msra.mxu0 %v3042_v3  ;;  %2465 = vmatpush1.bf16.msra.mxu1 %v3045_v11 }
 0x556   :  { %2435 = vmatprep.subr.bf16.mxu0 %v3050_v19  ;;  %2467 = vmatprep.subr.bf16.mxu1 %v3052_v9 }
 0x557   :  { %1648 = vmatprep.mubr.f32.mxu0 %v2770_v0  ;;  %1719 = vmatprep.mubr.f32.mxu1 %v2770_v0 }
 0x559   :  { %2437 = vmatpush1.bf16.msra.mxu0 %v3054_v17  ;;  %2469 = vmatpush1.bf16.msra.mxu1 %v3057_v33 }
 0x55a   :  { %2439 = vmatprep.subr.bf16.mxu0 %v3062_v62  ;;  %2471 = vmatprep.subr.bf16.mxu1 %v3064_v31 }
 0x55d   :  { %2441 = vmatpush1.bf16.msra.mxu0 %v3066_v32  ;;  %2473 = vmatpush1.bf16.msra.mxu1 %v3069_v47 }
 0x55e   :  { %2443 = vmatprep.subr.bf16.mxu0 %v3074_v29  ;;  %2475 = vmatprep.subr.bf16.mxu1 %v3076_v27 }
 0x561   :  { %2445 = vmatpush1.bf16.msra.mxu0 %v3013_v14  ;;  %2477 = vmatpush1.bf16.msra.mxu1 %v3078_v38  ;;  %v1270_v14 = vld [vmem:[#allocation4 + $0xa0] sm:$0xff] }
 0x562   :  { %2447 = vmatprep.subr.bf16.mxu0 %v3084_v7  ;;  %2479 = vmatprep.subr.bf16.mxu1 %v3086_v50 }
 0x565   :  { %2449 = vmatpush1.bf16.msra.mxu0 %v3017_v26  ;;  %2481 = vmatpush1.bf16.msra.mxu1 %v3088_v51  ;;  %v1271_v26 = vld [vmem:[#allocation4 + $0xa8] sm:$0xff] }
 0x566   :  { %2451 = vmatprep.subr.bf16.mxu0 %v3093_v57  ;;  %2483 = vmatprep.subr.bf16.mxu1 %v3096_v22 }
 0x569   :  { %2453 = vmatpush1.bf16.msra.mxu0 %v3020_v37  ;;  %2485 = vmatpush1.bf16.msra.mxu1 %v3098_v63 }
 0x56a   :  { %2455 = vmatprep.subr.bf16.mxu0 %v3101_v13  ;;  %2487 = vmatprep.subr.bf16.mxu1 %v3104_v8 }
 0x56d   :  { %2457 = vmatpush1.bf16.msra.mxu0 %v3024_v52  ;;  %2489 = vmatpush1.bf16.msra.mxu1 %v3109_v46 }
 0x56e   :  { %2459 = vmatprep.subr.bf16.mxu0 %v3111_v15  ;;  %2491 = vmatprep.subr.bf16.mxu1 %v3114_v58 }
 0x571   :  { %2461 = vmatpush1.bf16.msra.mxu0 %v3028_v1  ;;  %2493 = vmatpush1.bf16.msra.mxu1 %v3119_v41 }
 0x572   :  { %2495 = vmatprep.subr.bf16.mxu0 %v3038_v4  ;;  %2527 = vmatprep.subr.bf16.mxu1 %v3040_v2 }
 0x627   :  { %v1405_v37 = vpop.f32.mrb[10].mxu0  ;;  %v1476_v45 = vpop.f32.mrb[10].mxu1 }
 0x628   :  { %v1481_v53 = vadd.f32 %v1405_v37, %v1270_v14  ;;  %v1407_v52 = vpop.f32.mrb[11].mxu0  ;;  %v1478_v23 = vpop.f32.mrb[11].mxu1  ;;  %v1483_v42 = vadd.f32 %v1476_v45, %v1272_v36  ;;  %v1761_v36 = vld [vmem:[#allocation4 + $0xe8] sm:$0xff] }
 0x629   :  { %v1482_v10 = vadd.f32 %v1407_v52, %v1271_v26  ;;  %v1484_v1 = vadd.f32 %v1478_v23, %v1273_v35 }
 0x62a   :  { %v2037_v28 = vmul.f32 -1.442695, %v1481_v53 }
 0x62b   :  { %v2038_v34 = vmul.f32 -1.442695, %v1482_v10  ;;  %v2039_v43 = vmul.f32 -1.442695, %v1484_v1  ;;  %v1760_v1 = vld [vmem:[#allocation4 + $0xe0] sm:$0xff] }
 0x62c   :  { %2646 = vpow2.f32 %v2037_v28 }
 0x62d   :  { %2648 = vpow2.f32 %v2038_v34 }
 0x62e   :  { %2650 = vpow2.f32 %v2039_v43 }
 0x62f   :  { %2652 = vtanh.f32 %v1483_v42 }
 0x636   :  { %v2647_v4 = vpop.eup %2646 }
 0x637   :  { %v2649_v55 = vpop.eup %2648  ;;  %v1488_v2 = vadd.f32 1.0, %v2647_v4 }
 0x638   :  { %v1494_v44 = vadd.f32 1.0, %v2649_v55  ;;  %v2651_v49 = vpop.eup %2650 }
 0x639   :  { %2654 = vrcp.f32 %v1488_v2  ;;  %v2653_v24 = vpop.eup %2652  ;;  %v1501_v59 = vadd.f32 1.0, %v2651_v49 }
 0x63a   :  { %2656 = vrcp.f32 %v1494_v44 }
 0x63b   :  { %2658 = vrcp.f32 %v1501_v59 }
 0x643   :  { %v2655_v54 = vpop.eup %2654 }
 0x644   :  { %v2657_v56 = vpop.eup %2656  ;;  %v1506_v39 = vmul.f32 %v2655_v54, %v2653_v24  ;;  %v1763_v54 = vld [vmem:[#allocation4 + $0xf8] sm:$0xff] }
 0x645   :  { %v1505_v60 = vmul.f32 %v2657_v56, %v3165_v30  ;;  %v2659_v5 = vpop.eup %2658 }
 0x647   :  { %v3203_v61 = vadd.f32 %v1506_v39, %v1505_v60  ;;  %v1762_v39 = vld [vmem:[#allocation4 + $0xf0] sm:$0xff] }
 0x649   :  { %2660 = vtanh.f32 %v3203_v61 }
 0x653   :  { %v2661_v6 = vpop.eup %2660 }
 0x654   :  { %v1509_v12 = vmul.f32 %v2661_v6, %v2659_v5 }
 0x656   :  { %1513 = vst [vmem:[#allocation9 + $0x28] sm:$0xff] %v1509_v12  ;;  %1649 = vmatmul.mubr.f32.vlgmr.msra.gmra.mrb[12].mxu0 %v1509_v12  ;;  %1720 = vmatmul.mubr.f32.vlgmr.msra.gmra.mrb[12].mxu1 %v1509_v12 }
 0x657   :  { %2497 = vmatpush1.bf16.msra.mxu0 %v3042_v3  ;;  %2529 = vmatpush1.bf16.msra.mxu1 %v3045_v11  ;;  %v1793_v3 = vld [vmem:[#allocation7 + $0xe0] sm:$0xff] }
 0x658   :  { %2499 = vmatprep.subr.bf16.mxu0 %v3050_v19  ;;  %2531 = vmatprep.subr.bf16.mxu1 %v3052_v9  ;;  %v1797_v19 = vld [vmem:[#allocation7 + $0x100] sm:$0xff] }
 0x659   :  { %1893 = vmatprep.mubr.f32.mxu0 %v2770_v0  ;;  %1964 = vmatprep.mubr.f32.mxu1 %v2770_v0  ;;  %v1789_v0 = vld [vmem:[#allocation7 + $0xc0] sm:$0xff] }
 0x65a   :  { %v2508_v11 = vpack.c.bf16 %v1793_v3, %v1789_v0  ;;  %v1801_v9 = vld [vmem:[#allocation7 + $0x120] sm:$0xff] }
 0x65b   :  { %2501 = vmatpush1.bf16.msra.mxu0 %v3054_v17  ;;  %2533 = vmatpush1.bf16.msra.mxu1 %v3057_v33  ;;  %v2512_v17 = vpack.c.bf16 %v1801_v9, %v1797_v19  ;;  %v1805_v33 = vld [vmem:[#allocation7 + $0x140] sm:$0xff] }
 0x65c   :  { %2503 = vmatprep.subr.bf16.mxu0 %v3062_v62  ;;  %2535 = vmatprep.subr.bf16.mxu1 %v3064_v31  ;;  %v1809_v62 = vld [vmem:[#allocation7 + $0x160] sm:$0xff] }
 0x65d   :  { %v2516_v31 = vpack.c.bf16 %v1809_v62, %v1805_v33 }
 0x65f   :  { %2505 = vmatpush1.bf16.msra.mxu0 %v3066_v32  ;;  %2537 = vmatpush1.bf16.msra.mxu1 %v3069_v47  ;;  %v1813_v32 = vld [vmem:[#allocation7 + $0x180] sm:$0xff] }
 0x660   :  { %2507 = vmatprep.subr.bf16.mxu0 %v3074_v29  ;;  %2539 = vmatprep.subr.bf16.mxu1 %v3076_v27  ;;  %v1817_v47 = vld [vmem:[#allocation7 + $0x1a0] sm:$0xff] }
 0x661   :  { %v2520_v29 = vpack.c.bf16 %v1817_v47, %v1813_v32  ;;  %v1821_v27 = vld [vmem:[#allocation7 + $0x1c0] sm:$0xff] }
 0x663   :  { %2541 = vmatpush1.bf16.msra.mxu1 %v3078_v38  ;;  %2509 = vmatpush1.bf16.msra.mxu0 %v2508_v11  ;;  %v1825_v38 = vld [vmem:[#allocation7 + $0x1e0] sm:$0xff] }
 0x664   :  { %2543 = vmatprep.subr.bf16.mxu1 %v3086_v50  ;;  %2511 = vmatprep.subr.bf16.mxu0 %v3084_v7  ;;  %v2524_v50 = vpack.c.bf16 %v1825_v38, %v1821_v27  ;;  %v1515_v7 = vld [vmem:[#allocation4 + $0xc0] sm:$0xff] }
 0x667   :  { %2545 = vmatpush1.bf16.msra.mxu1 %v3088_v51  ;;  %2513 = vmatpush1.bf16.msra.mxu0 %v2512_v17  ;;  %v1516_v51 = vld [vmem:[#allocation4 + $0xc8] sm:$0xff] }
 0x668   :  { %2547 = vmatprep.subr.bf16.mxu1 %v3096_v22  ;;  %2515 = vmatprep.subr.bf16.mxu0 %v3093_v57 }
 0x66b   :  { %2549 = vmatpush1.bf16.msra.mxu1 %v3098_v63  ;;  %2517 = vmatpush1.bf16.msra.mxu0 %v2516_v31 }
 0x66c   :  { %2551 = vmatprep.subr.bf16.mxu1 %v3104_v8  ;;  %2519 = vmatprep.subr.bf16.mxu0 %v3101_v13 }
 0x66f   :  { %2553 = vmatpush1.bf16.msra.mxu1 %v3109_v46  ;;  %2521 = vmatpush1.bf16.msra.mxu0 %v2520_v29 }
 0x670   :  { %2555 = vmatprep.subr.bf16.mxu1 %v3114_v58  ;;  %2523 = vmatprep.subr.bf16.mxu0 %v3111_v15 }
 0x673   :  { %2557 = vmatpush1.bf16.msra.mxu1 %v3119_v41  ;;  %2525 = vmatpush1.bf16.msra.mxu0 %v2524_v50 }
 0x729   :  { %v1650_v22 = vpop.f32.mrb[12].mxu0  ;;  %v1721_v63 = vpop.f32.mrb[12].mxu1 }
 0x72a   :  { %v1726_v8 = vadd.f32 %v1650_v22, %v1515_v7  ;;  %v1652_v46 = vpop.f32.mrb[13].mxu0  ;;  %v1723_v57 = vpop.f32.mrb[13].mxu1  ;;  %v1728_v30 = vadd.f32 %v1721_v63, %v1517_v21 }
 0x72b   :  { %v1727_v58 = vadd.f32 %v1652_v46, %v1516_v51  ;;  %v1729_v13 = vadd.f32 %v1723_v57, %v1518_v20 }
 0x72c   :  { %v2040_v41 = vmul.f32 -1.442695, %v1726_v8 }
 0x72d   :  { %v2041_v16 = vmul.f32 -1.442695, %v1727_v58  ;;  %v2042_v25 = vmul.f32 -1.442695, %v1729_v13 }
 0x72e   :  { %2662 = vpow2.f32 %v2040_v41 }
 0x72f   :  { %2664 = vpow2.f32 %v2041_v16 }
 0x730   :  { %2666 = vpow2.f32 %v2042_v25 }
 0x731   :  { %2668 = vtanh.f32 %v1728_v30 }
 0x738   :  { %v2663_v48 = vpop.eup %2662 }
 0x739   :  { %v2665_v15 = vpop.eup %2664  ;;  %v1733_v18 = vadd.f32 1.0, %v2663_v48 }
 0x73a   :  { %v1739_v40 = vadd.f32 1.0, %v2665_v15  ;;  %v2667_v14 = vpop.eup %2666 }
 0x73b   :  { %2670 = vrcp.f32 %v1733_v18  ;;  %v2669_v26 = vpop.eup %2668  ;;  %v1746_v52 = vadd.f32 1.0, %v2667_v14 }
 0x73c   :  { %2672 = vrcp.f32 %v1739_v40 }
 0x73d   :  { %2674 = vrcp.f32 %v1746_v52 }
 0x745   :  { %v2671_v37 = vpop.eup %2670 }
 0x746   :  { %v2673_v45 = vpop.eup %2672  ;;  %v1751_v53 = vmul.f32 %v2671_v37, %v2669_v26 }
 0x747   :  { %v1750_v23 = vmul.f32 %v2673_v45, %v3203_v61  ;;  %v2675_v28 = vpop.eup %2674 }
 0x749   :  { %v1752_v10 = vadd.f32 %v1751_v53, %v1750_v23 }
 0x74b   :  { %2676 = vtanh.f32 %v1752_v10 }
 0x755   :  { %v2677_v34 = vpop.eup %2676 }
 0x756   :  { %v1754_v35 = vmul.f32 %v2677_v34, %v2675_v28 }
 0x758   :  { %1758 = vst [vmem:[#allocation9 + $0x30] sm:$0xff] %v1754_v35  ;;  %1894 = vmatmul.mubr.f32.vlgmr.msra.gmra.mrb[14].mxu0 %v1754_v35  ;;  %1965 = vmatmul.mubr.f32.vlgmr.msra.gmra.mrb[14].mxu1 %v1754_v35 }
 0x82b   :  { %v1895_v43 = vpop.f32.mrb[14].mxu0  ;;  %v1966_v42 = vpop.f32.mrb[14].mxu1 }
 0x82c   :  { %v1971_v4 = vadd.f32 %v1895_v43, %v1760_v1  ;;  %v1897_v55 = vpop.f32.mrb[15].mxu0  ;;  %v1968_v2 = vpop.f32.mrb[15].mxu1  ;;  %v1973_v60 = vadd.f32 %v1966_v42, %v1762_v39 }
 0x82d   :  { %v1972_v44 = vadd.f32 %v1897_v55, %v1761_v36  ;;  %v1974_v56 = vadd.f32 %v1968_v2, %v1763_v54 }
 0x82e   :  { %v2043_v49 = vmul.f32 -1.442695, %v1971_v4 }
 0x82f   :  { %v2044_v24 = vmul.f32 -1.442695, %v1972_v44  ;;  %v2045_v59 = vmul.f32 -1.442695, %v1974_v56 }
 0x830   :  { %2678 = vpow2.f32 %v2043_v49 }
 0x831   :  { %2680 = vpow2.f32 %v2044_v24 }
 0x832   :  { %2682 = vpow2.f32 %v2045_v59 }
 0x833   :  { %2684 = vtanh.f32 %v1973_v60 }
 0x83a   :  { %v2679_v61 = vpop.eup %2678 }
 0x83b   :  { %v2681_v5 = vpop.eup %2680  ;;  %v1978_v6 = vadd.f32 1.0, %v2679_v61 }
 0x83c   :  { %v1984_v12 = vadd.f32 1.0, %v2681_v5  ;;  %v2683_v0 = vpop.eup %2682 }
 0x83d   :  { %2686 = vrcp.f32 %v1978_v6  ;;  %v2685_v3 = vpop.eup %2684  ;;  %v1991_v17 = vadd.f32 1.0, %v2683_v0 }
 0x83e   :  { %2688 = vrcp.f32 %v1984_v12 }
 0x83f   :  { %2690 = vrcp.f32 %v1991_v17 }
 0x847   :  { %v2687_v11 = vpop.eup %2686 }
 0x848   :  { %v2689_v19 = vpop.eup %2688  ;;  %v1996_v9 = vmul.f32 %v2687_v11, %v2685_v3 }
 0x849   :  { %v1995_v33 = vmul.f32 %v2689_v19, %v1752_v10  ;;  %v2691_v31 = vpop.eup %2690 }
 0x84b   :  { %v1997_v62 = vadd.f32 %v1996_v9, %v1995_v33 }
 0x84d   :  { %2692 = vtanh.f32 %v1997_v62 }
 0x857   :  { %v2693_v32 = vpop.eup %2692 }
 0x858   :  { %v1999_v47 = vmul.f32 %v2693_v32, %v2691_v31 }
 0x85a   :  { %2003 = vst [vmem:[#allocation9 + $0x38] sm:$0xff] %v1999_v47 }
 0x85b   :  { %2749 = shalt.err (!%p2746_p6)
}
 0x85c   :  { %s2750_s10 = scalar_lea.hbm %s3248_s2, 1024 }
 0x85d   :  { %p2751_p7 = scmp.ne.s32.totalorder %s3248_s2, %s2750_s10  ;;  %p2754_p8 = scmp.lt.u32.totalorder %s2750_s10, %s3248_s2 }
 0x85f   :  { %p2756_p9 = pnand %p2754_p8, %p2751_p7 }
 0x861   :  { %2759 = shalt.err (!%p2756_p9)
}
 0x862   :  { %s2772_s15 = smov 128   ;;  %s2773_s16 = smov 8  }
 0x863   :  { %2015 = dma.vmem_to_hbm [thread:$0]  %s2010_s6, 1024, %s3248_s2, [#allocation6], %s2772_s15, %s2772_s15, %s2773_s16  }
 0x864   :  { %2764 = dma.done.wait [#allocation6], 1024  }
 0x865   :  { %2765 = vsyncadd [#allocation6], 4294966272 }
 0x866   :  { %2019 = vsyncpa [#allocation5], 1 }
 0x867   :  { %2020 = vsyncpa [#allocation8], 1 }
 0x868   :  { %2021 = vsyncpa [#allocation6], 1 }

</bundles_post_ra>
